<compile_context>
chip_gen: v5e
topology: v5e:2x2
jax: 0.10.0
libtpu: 0.0.40
codegen_flags: <defaults>
</compile_context>

<pallas_src>
import functools

import jax
import jax.numpy as jnp
import numpy as np
from jax.experimental import pallas as pl
from jax.experimental.pallas import tpu as pltpu


# ----------------------------- Pallas kernel -----------------------------
def _deepfm_kernel(x_ref, tsp_ref, wd_ref, w2_ref, b2_ref, wout_ref, out_ref, *,
                   n_fields, v_total, emb_size, h1):
    x = x_ref[...]                                   # [Bt, F + D + 1]
    bt = x.shape[0]

    # ---- in-kernel embedding "gather": one-hot rows @ resident table (MXU) ----
    # Indices arrive as exactly-representable f32 values with field offsets
    # already added; distinct fields map to disjoint [0, Vtot) ranges.
    idx = x[:, 0:n_fields].astype(jnp.int32)         # [Bt, F]
    lane = jax.lax.broadcasted_iota(jnp.int32, (bt, v_total), 1)
    onehot = (idx[:, 0:1] == lane).astype(jnp.float32)
    for f in range(1, n_fields):
        onehot = onehot + (idx[:, f:f + 1] == lane).astype(jnp.float32)

    # Sparse side: one matmul gives [W1_sparse contribution | 1st-order sum |
    # sum_emb | sum-of-squares].
    sp = jnp.dot(onehot, tsp_ref[...], preferred_element_type=jnp.float32)   # [Bt, H1+E+2]
    # Dense side: [x_dense | 1] @ [[W1_dense | w_dense], [b1 | b_dense]].
    dn = jnp.dot(x[:, n_fields:], wd_ref[...],
                 preferred_element_type=jnp.float32)                         # [Bt, H1+1]

    # ---- FM part ----
    lin = sp[:, h1:h1 + 1] + dn[:, h1:h1 + 1]                                # [Bt, 1]
    sum_emb = sp[:, h1 + 1:h1 + 1 + emb_size]                                # [Bt, E]
    sum_sq = sp[:, h1 + 1 + emb_size:h1 + 2 + emb_size]                      # [Bt, 1]
    cross = 0.5 * (jnp.sum(sum_emb * sum_emb, axis=1, keepdims=True) - sum_sq)
    fm_col = lin + cross

    # ---- DNN tower ----
    h = jnp.maximum(sp[:, 0:h1] + dn[:, 0:h1], 0.0)                          # [Bt, H1]
    # TODO(synk): nn.Dropout is inference-mode identity here (no RNG dropout in kernel).
    h = jnp.dot(h, w2_ref[...], preferred_element_type=jnp.float32) + b2_ref[...]
    h = jnp.maximum(h, 0.0)                                                  # [Bt, H2]
    # N=1 output layer as VPU multiply + lane reduce (keeps MXU free).
    dnn_col = jnp.sum(h * wout_ref[...], axis=1, keepdims=True)              # [Bt, 1]

    out_ref[...] = jax.nn.sigmoid(fm_col + dnn_col)                          # [Bt, 1]


# ----------------------------- wrapper -----------------------------
def deepfm_forward(params, X_sparse, X_dense, *, block_b=None):
    """X_sparse: int32 [B, F]; X_dense: float32 [B, D] -> float32 [B]."""
    # TODO(synk): the X_dense=None branch of the PyTorch module is not implemented
    # (kernel assumes dense_feature_size != 0).
    B, F = X_sparse.shape
    D = X_dense.shape[1]
    E = params["fm_emb"][0].shape[1]
    H1 = params["b1"].shape[1]
    H2 = params["w2"].shape[1]
    vocab = [int(t.shape[0]) for t in params["fm_emb"]]
    Vtot = int(np.sum(vocab))
    off = np.concatenate([[0], np.cumsum(vocab)[:-1]]).astype(np.int32)

    # Auto tile: multiple of 128, capped at 512, >= 2 grid steps when possible
    # (v7x has two TensorCores; a 1-step grid leaves one idle).
    if block_b is None:
        half = -(-B // 2)
        block_b = max(128, min(512, ((half + 127) // 128) * 128))
    assert block_b % 8 == 0
    B_pad = -(-B // block_b) * block_b
    pad = B_pad - B

    # Fused streamed operand: [offset sparse idx (exact as f32) | x_dense | 1].
    idx_off = (X_sparse.astype(jnp.int32) + jnp.asarray(off)[None, :]).astype(jnp.float32)
    fused = jnp.concatenate(
        [idx_off, X_dense.astype(jnp.float32), jnp.ones((B, 1), jnp.float32)], axis=1)
    fused = jnp.pad(fused, ((0, pad), (0, 0)))       # padded rows -> finite garbage, sliced off

    # Resident sparse-side matrix [Vtot, H1 + E + 2]:
    #   [ fm_table @ W1_sparse (per-field block-folded) | lin table | fm table | rowsum(fm^2) ]
    fm_cat = jnp.concatenate(params["fm_emb"], axis=0)                       # [Vtot, E]
    lin_cat = jnp.concatenate(params["lin_emb"], axis=0)                     # [Vtot, 1]
    sq_sum = jnp.sum(fm_cat * fm_cat, axis=1, keepdims=True)                 # [Vtot, 1]
    w1s_folded = jnp.concatenate(
        [jnp.dot(params["fm_emb"][f], params["w1_sparse"][f * E:(f + 1) * E],
                 precision=jax.lax.Precision.HIGHEST) for f in range(F)], axis=0)  # [Vtot, H1]
    t_sparse = jnp.concatenate([w1s_folded, lin_cat, fm_cat, sq_sum], axis=1)  # [Vtot, H1+E+2]

    # Resident dense-side matrix [D+1, H1+1]: [[W1_dense | w_dense], [b1 | b_dense]].
    wd_cat = jnp.concatenate(
        [jnp.concatenate([params["w1_dense"], params["w_dense"]], axis=1),
         jnp.concatenate([params["b1"], params["b_dense"]], axis=1)], axis=0)

    wout_row = params["w_out"][:, 0][None, :]                                # [1, H2]

    kernel = functools.partial(_deepfm_kernel, n_fields=F, v_total=Vtot,
                               emb_size=E, h1=H1)
    resident = lambda i: (0, 0)   # constant index_map -> DMA'd once, stays VMEM-resident

    out = pl.pallas_call(
        kernel,
        out_shape=jax.ShapeDtypeStruct((B_pad, 1), jnp.float32),
        grid=(B_pad // block_b,),
        in_specs=[
            pl.BlockSpec((block_b, F + D + 1), lambda i: (i, 0)),  # streamed rows (tiled)
            pl.BlockSpec((Vtot, H1 + E + 2), resident),            # sparse-side folded table
            pl.BlockSpec((D + 1, H1 + 1), resident),               # dense-side matrix
            pl.BlockSpec((H1, H2), resident),                      # w2
            pl.BlockSpec((1, H2), resident),                       # b2
            pl.BlockSpec((1, H2), resident),                       # w_out row
        ],
        out_specs=pl.BlockSpec((block_b, 1), lambda i: (i, 0)),
        compiler_params=pltpu.CompilerParams(
            dimension_semantics=("parallel",)),
    )(fused, t_sparse, wd_cat, params["w2"], params["b2"], wout_row)
    return out[:B, 0]


# ----------------------------- reference (pure JAX) -----------------------------
def deepfm_reference(params, X_sparse, X_dense):
    B, F = X_sparse.shape
    lin_sp = jnp.concatenate(
        [params["lin_emb"][i][X_sparse[:, i]] for i in range(F)], axis=1)
    fm_emb = jnp.stack(
        [params["fm_emb"][i][X_sparse[:, i]] for i in range(F)], axis=1)
    linear_part = (jnp.sum(lin_sp, axis=1, keepdims=True)
                   + X_dense @ params["w_dense"] + params["b_dense"])
    sum_emb = jnp.sum(fm_emb, axis=1)
    cross = 0.5 * jnp.sum(sum_emb**2 - jnp.sum(fm_emb**2, axis=1),
                          axis=1, keepdims=True)
    fm_logit = linear_part + cross
    x = jnp.concatenate([fm_emb.reshape(B, -1), X_dense], axis=1)
    w1 = jnp.concatenate([params["w1_sparse"], params["w1_dense"]], axis=0)
    x = jnp.maximum(x @ w1 + params["b1"], 0.0)
    x = jnp.maximum(x @ params["w2"] + params["b2"], 0.0)
    dnn_logit = x @ params["w_out"]
    return jax.nn.sigmoid(fm_logit + dnn_logit)[:, 0]


# ----------------------------- main -----------------------------
if __name__ == "__main__":
    sparse_feature_columns = [10, 20, 30, 40]   # vocab sizes
    dense_feature_size = 4
    emb_size = 8
    hidden_dims = [64, 32]
    num_classes = 1
    init_std = 1e-4
    F = len(sparse_feature_columns)
    dnn_input_size = emb_size * F + dense_feature_size

    key = jax.random.PRNGKey(0)
    keys = jax.random.split(key, 16)

    params = {}
    params["lin_emb"] = [
        jax.random.normal(jax.random.fold_in(keys[0], i), (v, 1), jnp.float32)
        for i, v in enumerate(sparse_feature_columns)
    ]
    params["fm_emb"] = [
        jax.random.normal(jax.random.fold_in(keys[1], i), (v, emb_size), jnp.float32)
        for i, v in enumerate(sparse_feature_columns)
    ]
    params["w_dense"] = jax.random.normal(keys[2], (dense_feature_size, 1), jnp.float32) * 0.1
    params["b_dense"] = jax.random.normal(keys[3], (1, 1), jnp.float32) * 0.1
    w1 = jax.random.normal(keys[4], (dnn_input_size, hidden_dims[0]), jnp.float32) * init_std
    params["w1_sparse"] = w1[: emb_size * F]
    params["w1_dense"] = w1[emb_size * F:]
    params["b1"] = jax.random.normal(keys[5], (1, hidden_dims[0]), jnp.float32) * 0.1
    params["w2"] = jax.random.normal(keys[6], (hidden_dims[0], hidden_dims[1]), jnp.float32) * init_std
    params["b2"] = jax.random.normal(keys[7], (1, hidden_dims[1]), jnp.float32) * 0.1
    params["w_out"] = jax.random.normal(keys[8], (hidden_dims[1], num_classes), jnp.float32) * 0.1

    def make_inputs(k, B):
        ks = jax.random.split(k, 2)
        X_sparse = jnp.stack(
            [jax.random.randint(jax.random.fold_in(ks[0], i), (B,), 0, v, jnp.int32)
             for i, v in enumerate(sparse_feature_columns)], axis=1)         # [B, F]
        X_dense = jax.random.normal(ks[1], (B, dense_feature_size), jnp.float32)
        return X_sparse, X_dense

    # Single-tile case (B=8 padded to one 128-row tile).
    Xs8, Xd8 = make_inputs(keys[9], 8)
    out = jax.block_until_ready(deepfm_forward(params, Xs8, Xd8))
    ref = jax.block_until_ready(deepfm_reference(params, Xs8, Xd8))
    assert out.shape == (8,)
    np.testing.assert_allclose(np.asarray(out), np.asarray(ref), rtol=1e-4, atol=2e-5)

    # Multi-tile case (B=300 -> auto tile 256 -> 2 grid steps, exercises padding
    # + multi-step "parallel" batch grid).
    Xs300, Xd300 = make_inputs(keys[10], 300)
    out2 = jax.block_until_ready(deepfm_forward(params, Xs300, Xd300))
    ref2 = jax.block_until_ready(deepfm_reference(params, Xs300, Xd300))
    assert out2.shape == (300,)
    np.testing.assert_allclose(np.asarray(out2), np.asarray(ref2), rtol=1e-4, atol=2e-5)

    print("KERNEL_OK")
</pallas_src>

<mosaic_0001>
module attributes {stable_mosaic.version = 11 : i64} {
  func.func @_deepfm_kernel(%arg0: i32, %arg1: memref<128x9xf32, #tpu.memory_space<vmem>>, %arg2: memref<100x74xf32, #tpu.memory_space<vmem>>, %arg3: memref<5x65xf32, #tpu.memory_space<vmem>>, %arg4: memref<64x32xf32, #tpu.memory_space<vmem>>, %arg5: memref<1x32xf32, #tpu.memory_space<vmem>>, %arg6: memref<1x32xf32, #tpu.memory_space<vmem>>, %arg7: memref<128x1xf32, #tpu.memory_space<vmem>>) attributes {dimension_semantics = [#tpu.dimension_semantics<parallel>], iteration_bounds = array<i64: 1>, scalar_prefetch = 0 : i64, scratch_operands = 0 : i64, tpu.core_type = #tpu.core_type<tc>, window_params = [{transform_indices = @transform_0, window_bounds = array<i64: 128, 9>}, {pipeline_mode = #tpu.pipeline_mode<synchronous>, transform_indices = @transform_1, window_bounds = array<i64: 100, 74>}, {pipeline_mode = #tpu.pipeline_mode<synchronous>, transform_indices = @transform_2, window_bounds = array<i64: 5, 65>}, {pipeline_mode = #tpu.pipeline_mode<synchronous>, transform_indices = @transform_3, window_bounds = array<i64: 64, 32>}, {pipeline_mode = #tpu.pipeline_mode<synchronous>, transform_indices = @transform_4, window_bounds = array<i64: 1, 32>}, {pipeline_mode = #tpu.pipeline_mode<synchronous>, transform_indices = @transform_5, window_bounds = array<i64: 1, 32>}, {transform_indices = @transform_6, window_bounds = array<i64: 128, 1>}]} {
    %c0 = arith.constant 0 : index
    %c0_0 = arith.constant 0 : index
    %0 = vector.load %arg1[%c0, %c0_0] : memref<128x9xf32, #tpu.memory_space<vmem>>, vector<128x9xf32>
    %1 = vector.extract_strided_slice %0 {offsets = [0, 0], sizes = [128, 4], strides = [1, 1]} : vector<128x9xf32> to vector<128x4xf32>
    %2 = arith.fptosi %1 : vector<128x4xf32> to vector<128x4xi32>
    %3 = tpu.iota {dimensions = array<i32: 1>} : vector<128x100xi32>
    %4 = vector.extract_strided_slice %2 {offsets = [0, 0], sizes = [128, 1], strides = [1, 1]} : vector<128x4xi32> to vector<128x1xi32>
    %5 = vector.broadcast %4 : vector<128x1xi32> to vector<128x100xi32>
    %6 = arith.cmpi eq, %5, %3 : vector<128x100xi32>
    %7 = arith.extui %6 : vector<128x100xi1> to vector<128x100xi32>
    %8 = arith.sitofp %7 : vector<128x100xi32> to vector<128x100xf32>
    %9 = vector.extract_strided_slice %2 {offsets = [0, 1], sizes = [128, 1], strides = [1, 1]} : vector<128x4xi32> to vector<128x1xi32>
    %10 = vector.broadcast %9 : vector<128x1xi32> to vector<128x100xi32>
    %11 = arith.cmpi eq, %10, %3 : vector<128x100xi32>
    %12 = arith.extui %11 : vector<128x100xi1> to vector<128x100xi32>
    %13 = arith.sitofp %12 : vector<128x100xi32> to vector<128x100xf32>
    %14 = arith.addf %8, %13 : vector<128x100xf32>
    %15 = vector.extract_strided_slice %2 {offsets = [0, 2], sizes = [128, 1], strides = [1, 1]} : vector<128x4xi32> to vector<128x1xi32>
    %16 = vector.broadcast %15 : vector<128x1xi32> to vector<128x100xi32>
    %17 = arith.cmpi eq, %16, %3 : vector<128x100xi32>
    %18 = arith.extui %17 : vector<128x100xi1> to vector<128x100xi32>
    %19 = arith.sitofp %18 : vector<128x100xi32> to vector<128x100xf32>
    %20 = arith.addf %14, %19 : vector<128x100xf32>
    %21 = vector.extract_strided_slice %2 {offsets = [0, 3], sizes = [128, 1], strides = [1, 1]} : vector<128x4xi32> to vector<128x1xi32>
    %22 = vector.broadcast %21 : vector<128x1xi32> to vector<128x100xi32>
    %23 = arith.cmpi eq, %22, %3 : vector<128x100xi32>
    %24 = arith.extui %23 : vector<128x100xi1> to vector<128x100xi32>
    %25 = arith.sitofp %24 : vector<128x100xi32> to vector<128x100xf32>
    %26 = arith.addf %20, %25 : vector<128x100xf32>
    %c0_1 = arith.constant 0 : index
    %c0_2 = arith.constant 0 : index
    %27 = vector.load %arg2[%c0_1, %c0_2] : memref<100x74xf32, #tpu.memory_space<vmem>>, vector<100x74xf32>
    %cst = arith.constant dense<0.000000e+00> : vector<128x74xf32>
    %28 = tpu.matmul %26, %27, %cst {dimension_numbers = #tpu.dot_dimension_numbers<[1], [0], [0], [1], [0, 0, 1, 1], [], []>} : vector<128x100xf32>, vector<100x74xf32>, vector<128x74xf32> -> vector<128x74xf32>
    %29 = vector.extract_strided_slice %0 {offsets = [0, 4], sizes = [128, 5], strides = [1, 1]} : vector<128x9xf32> to vector<128x5xf32>
    %c0_3 = arith.constant 0 : index
    %c0_4 = arith.constant 0 : index
    %30 = vector.load %arg3[%c0_3, %c0_4] : memref<5x65xf32, #tpu.memory_space<vmem>>, vector<5x65xf32>
    %cst_5 = arith.constant dense<0.000000e+00> : vector<128x65xf32>
    %31 = tpu.matmul %29, %30, %cst_5 {dimension_numbers = #tpu.dot_dimension_numbers<[1], [0], [0], [1], [0, 0, 1, 1], [], []>} : vector<128x5xf32>, vector<5x65xf32>, vector<128x65xf32> -> vector<128x65xf32>
    %32 = vector.extract_strided_slice %28 {offsets = [0, 64], sizes = [128, 1], strides = [1, 1]} : vector<128x74xf32> to vector<128x1xf32>
    %33 = vector.extract_strided_slice %31 {offsets = [0, 64], sizes = [128, 1], strides = [1, 1]} : vector<128x65xf32> to vector<128x1xf32>
    %34 = arith.addf %32, %33 : vector<128x1xf32>
    %35 = vector.extract_strided_slice %28 {offsets = [0, 65], sizes = [128, 8], strides = [1, 1]} : vector<128x74xf32> to vector<128x8xf32>
    %36 = vector.extract_strided_slice %28 {offsets = [0, 73], sizes = [128, 1], strides = [1, 1]} : vector<128x74xf32> to vector<128x1xf32>
    %37 = arith.mulf %35, %35 : vector<128x8xf32>
    %cst_6 = arith.constant dense<0.000000e+00> : vector<128xf32>
    %38 = vector.multi_reduction <add>, %37, %cst_6 [1] : vector<128x8xf32> to vector<128xf32>
    %39 = vector.shape_cast %38 : vector<128xf32> to vector<128x1xf32>
    %40 = arith.subf %39, %36 : vector<128x1xf32>
    %cst_7 = arith.constant 5.000000e-01 : f32
    %41 = vector.broadcast %cst_7 : f32 to vector<128x1xf32>
    %42 = arith.mulf %41, %40 : vector<128x1xf32>
    %43 = arith.addf %34, %42 : vector<128x1xf32>
    %44 = vector.extract_strided_slice %28 {offsets = [0, 0], sizes = [128, 64], strides = [1, 1]} : vector<128x74xf32> to vector<128x64xf32>
    %45 = vector.extract_strided_slice %31 {offsets = [0, 0], sizes = [128, 64], strides = [1, 1]} : vector<128x65xf32> to vector<128x64xf32>
    %46 = arith.addf %44, %45 : vector<128x64xf32>
    %cst_8 = arith.constant 0.000000e+00 : f32
    %47 = vector.broadcast %cst_8 : f32 to vector<128x64xf32>
    %48 = arith.maximumf %46, %47 : vector<128x64xf32>
    %c0_9 = arith.constant 0 : index
    %c0_10 = arith.constant 0 : index
    %49 = vector.load %arg4[%c0_9, %c0_10] : memref<64x32xf32, #tpu.memory_space<vmem>>, vector<64x32xf32>
    %cst_11 = arith.constant dense<0.000000e+00> : vector<128x32xf32>
    %50 = tpu.matmul %48, %49, %cst_11 {dimension_numbers = #tpu.dot_dimension_numbers<[1], [0], [0], [1], [0, 0, 1, 1], [], []>} : vector<128x64xf32>, vector<64x32xf32>, vector<128x32xf32> -> vector<128x32xf32>
    %c0_12 = arith.constant 0 : index
    %c0_13 = arith.constant 0 : index
    %51 = vector.load %arg5[%c0_12, %c0_13] : memref<1x32xf32, #tpu.memory_space<vmem>>, vector<1x32xf32>
    %52 = vector.broadcast %51 : vector<1x32xf32> to vector<128x32xf32>
    %53 = arith.addf %50, %52 : vector<128x32xf32>
    %cst_14 = arith.constant 0.000000e+00 : f32
    %54 = vector.broadcast %cst_14 : f32 to vector<128x32xf32>
    %55 = arith.maximumf %53, %54 : vector<128x32xf32>
    %c0_15 = arith.constant 0 : index
    %c0_16 = arith.constant 0 : index
    %56 = vector.load %arg6[%c0_15, %c0_16] : memref<1x32xf32, #tpu.memory_space<vmem>>, vector<1x32xf32>
    %57 = vector.broadcast %56 : vector<1x32xf32> to vector<128x32xf32>
    %58 = arith.mulf %55, %57 : vector<128x32xf32>
    %cst_17 = arith.constant dense<0.000000e+00> : vector<128xf32>
    %59 = vector.multi_reduction <add>, %58, %cst_17 [1] : vector<128x32xf32> to vector<128xf32>
    %60 = vector.shape_cast %59 : vector<128xf32> to vector<128x1xf32>
    %61 = arith.addf %43, %60 : vector<128x1xf32>
    %62 = arith.negf %61 : vector<128x1xf32>
    %63 = math.exp %62 : vector<128x1xf32>
    %cst_18 = arith.constant 1.000000e+00 : f32
    %64 = vector.broadcast %cst_18 : f32 to vector<128x1xf32>
    %65 = arith.addf %64, %63 : vector<128x1xf32>
    %66 = arith.divf %64, %65 : vector<128x1xf32>
    %c0_19 = arith.constant 0 : index
    %c0_20 = arith.constant 0 : index
    %67 = vector.load %arg7[%c0_19, %c0_20] : memref<128x1xf32, #tpu.memory_space<vmem>>, vector<128x1xf32>
    tpu.vector_store %arg7[%c0_19, %c0_20], %66 {strides = array<i32>} : memref<128x1xf32, #tpu.memory_space<vmem>>, vector<128x1xf32>,
    return
  }
  func.func @transform_0(%arg0: i32) -> (i32, i32) {
    %c0_i32 = arith.constant 0 : i32
    %c0_i32_0 = arith.constant 0 : i32
    return %arg0, %c0_i32 : i32, i32
  }
  func.func @transform_1(%arg0: i32) -> (i32, i32) {
    %c0_i32 = arith.constant 0 : i32
    %c0_i32_0 = arith.constant 0 : i32
    %c0_i32_1 = arith.constant 0 : i32
    return %c0_i32, %c0_i32_0 : i32, i32
  }
  func.func @transform_2(%arg0: i32) -> (i32, i32) {
    %c0_i32 = arith.constant 0 : i32
    %c0_i32_0 = arith.constant 0 : i32
    %c0_i32_1 = arith.constant 0 : i32
    return %c0_i32, %c0_i32_0 : i32, i32
  }
  func.func @transform_3(%arg0: i32) -> (i32, i32) {
    %c0_i32 = arith.constant 0 : i32
    %c0_i32_0 = arith.constant 0 : i32
    %c0_i32_1 = arith.constant 0 : i32
    return %c0_i32, %c0_i32_0 : i32, i32
  }
  func.func @transform_4(%arg0: i32) -> (i32, i32) {
    %c0_i32 = arith.constant 0 : i32
    %c0_i32_0 = arith.constant 0 : i32
    %c0_i32_1 = arith.constant 0 : i32
    return %c0_i32, %c0_i32_0 : i32, i32
  }
  func.func @transform_5(%arg0: i32) -> (i32, i32) {
    %c0_i32 = arith.constant 0 : i32
    %c0_i32_0 = arith.constant 0 : i32
    %c0_i32_1 = arith.constant 0 : i32
    return %c0_i32, %c0_i32_0 : i32, i32
  }
  func.func @transform_6(%arg0: i32) -> (i32, i32) {
    %c0_i32 = arith.constant 0 : i32
    %c0_i32_0 = arith.constant 0 : i32
    return %arg0, %c0_i32 : i32, i32
  }
}

</mosaic_0001>

<bundles_post_ra>
// kernel: tpu_custom_call.1
= control target key start
LH: loop header
LB: loop body
LE: loop exit
PB: predicated region body
PF: predicated region fallthrough
CT: control target
= control target key end

     0   :  { %v1994_v0 = vmov 0   ;;  %s3104_s0 = inlined_call_operand.vmem [shape: f32[128,9], index: 0, kind: input, shape index: {}]   ;;  %s3105_s1 = inlined_call_operand.vmem [shape: f32[100,74], index: 1, kind: input, shape index: {}]   ;;  %s3106_s2 = inlined_call_operand.vmem [shape: f32[5,65], index: 2, kind: input, shape index: {}]   ;;  %s3107_s3 = inlined_call_operand.vmem [shape: f32[64,32], index: 3, kind: input, shape index: {}]   ;;  %s3108_s4 = inlined_call_operand.vmem [shape: f32[1,32], index: 4, kind: input, shape index: {}]   ;;  %s3109_s5 = inlined_call_operand.vmem [shape: f32[1,32], index: 5, kind: input, shape index: {}]   ;;  %s3110_s6 = inlined_call_operand.vmem [shape: f32[128,1], index: 6, kind: output, shape index: {}]  }
   0x1   :  { %1903 = vset.pattern.permute.xlu2 %v1994_v0  ;;  %1902 = vset.pattern.permute.xlu1 %v1994_v0  ;;  %v2041_v1 = vld [vmem:[%s3104_s0 + $0x20] sm:$0xff]  ;;  %v2046_v2 = vld [vmem:[%s3104_s0 + $0x10] sm:$0xff]  ;;  %v2060_v6 = vld [vmem:[%s3104_s0 + $0x28] sm:$0xff] }
   0x2   :  { %v2051_v3 = vld [vmem:[%s3104_s0] sm:$0xff]  ;;  %1901 = vset.pattern.permute.xlu0 %v1994_v0  ;;  %vm1832_vm0 = vcmp.lt.s32.totalorder %v2041_v1, 0  ;;  %v1833_v4 = vceil.f32 %v2041_v1  ;;  %v1834_v5 = vfloor.f32 %v2041_v1  ;;  %vm1822_vm1 = vcmp.lt.s32.totalorder %v2046_v2, 0  ;;  %v2065_v7 = vld [vmem:[%s3104_s0 + $0x18] sm:$0xff]  ;;  %v2077_v14 = vld [vmem:[%s3104_s0 + $0x8] sm:$0xff] }
   0x3   :  { %v1823_v8 = vceil.f32 %v2046_v2  ;;  %v1824_v9 = vfloor.f32 %v2046_v2  ;;  %vm1812_vm2 = vcmp.lt.s32.totalorder %v2051_v3, 0  ;;  %v1813_v10 = vceil.f32 %v2051_v3  ;;  %v2100_v27 = vld [vmem:[%s3104_s0 + $0x40] sm:$0xff]  ;;  %v2105_v29 = vld [vmem:[%s3104_s0 + $0x38] sm:$0xff]  ;;  %v2112_v31 = vld [vmem:[%s3104_s0 + $0x30] sm:$0xff] }
   0x4   :  { %v1835_v11 = vsel %vm1832_vm0, %v1833_v4, %v1834_v5  ;;  %v1814_v12 = vfloor.f32 %v2051_v3  ;;  %vm1837_vm3 = vcmp.lt.s32.totalorder %v2060_v6, 0  ;;  %v1838_v13 = vceil.f32 %v2060_v6  ;;  %v2133_v42 = vld [vmem:[%s3104_s0 + $0x58] sm:$0xff]  ;;  %v2138_v44 = vld [vmem:[%s3104_s0 + $0x50] sm:$0xff]  ;;  %v2145_v46 = vld [vmem:[%s3104_s0 + $0x48] sm:$0xff] }
   0x5   :  { %v2079_v15 = vcvt.f32.s32 %v1835_v11  ;;  %v1825_v16 = vsel %vm1822_vm1, %v1823_v8, %v1824_v9  ;;  %v1839_v17 = vfloor.f32 %v2060_v6  ;;  %vm1827_vm4 = vcmp.lt.s32.totalorder %v2065_v7, 0  ;;  %v2166_v57 = vld [vmem:[%s3104_s0 + $0x70] sm:$0xff]  ;;  %v2171_v59 = vld [vmem:[%s3104_s0 + $0x68] sm:$0xff]  ;;  %v2178_v61 = vld [vmem:[%s3104_s0 + $0x60] sm:$0xff] }
   0x6   :  { %v2083_v18 = vcvt.f32.s32 %v1825_v16  ;;  %v1815_v19 = vsel %vm1812_vm2, %v1813_v10, %v1814_v12  ;;  %v1828_v20 = vceil.f32 %v2065_v7  ;;  %v1829_v21 = vfloor.f32 %v2065_v7 }
   0x7   :  { %70 = vperm.xlu2 %1903, %v2079_v15   ;;  %v2088_v22 = vcvt.f32.s32 %v1815_v19  ;;  %vm1817_vm5 = vcmp.lt.s32.totalorder %v2077_v14, 0  ;;  %v1818_v23 = vceil.f32 %v2077_v14  ;;  %v1840_v24 = vsel %vm1837_vm3, %v1838_v13, %v1839_v17  ;;  %v2201_v17 = vld [vmem:[%s3104_s0 + $0x78] sm:$0xff]  ;;  %s1996_s0 = smov 124  }
   0x8   :  { %64 = vperm.xlu1 %1902, %v2083_v18   ;;  %v1819_v25 = vfloor.f32 %v2077_v14  ;;  %v1830_v26 = vsel %vm1827_vm4, %v1828_v20, %v1829_v21  ;;  %v2107_v30 = vcvt.f32.s32 %v1840_v24  ;;  %v1853_v33 = vceil.f32 %v2100_v27 }
   0x9   :  { %58 = vperm.xlu0 %1901, %v2088_v22   ;;  %v2114_v32 = vcvt.f32.s32 %v1830_v26  ;;  %v1854_v34 = vfloor.f32 %v2100_v27  ;;  %vm1852_vm6 = vcmp.lt.s32.totalorder %v2100_v27, 0  ;;  %v1848_v36 = vceil.f32 %v2105_v29 }
   0xa   :  { %v1820_v28 = vsel %vm1817_vm5, %v1818_v23, %v1819_v25  ;;  %v1849_v37 = vfloor.f32 %v2105_v29  ;;  %vm1847_vm7 = vcmp.lt.s32.totalorder %v2105_v29, 0  ;;  %v1843_v38 = vceil.f32 %v2112_v31 }
   0xb   :  { %v2118_v35 = vcvt.f32.s32 %v1820_v28  ;;  %v1844_v39 = vfloor.f32 %v2112_v31  ;;  %vm1842_vm8 = vcmp.lt.s32.totalorder %v2112_v31, 0  ;;  %v1855_v40 = vsel %vm1852_vm6, %v1853_v33, %v1854_v34 }
   0xc   :  { %v1850_v41 = vsel %vm1847_vm7, %v1848_v36, %v1849_v37  ;;  %v2140_v45 = vcvt.f32.s32 %v1855_v40  ;;  %v1868_v48 = vceil.f32 %v2133_v42  ;;  %v1869_v49 = vfloor.f32 %v2133_v42 }
   0xd   :  { %v1845_v43 = vsel %vm1842_vm8, %v1843_v38, %v1844_v39  ;;  %v2147_v47 = vcvt.f32.s32 %v1850_v41  ;;  %vm1867_vm9 = vcmp.lt.s32.totalorder %v2133_v42, 0  ;;  %v1863_v51 = vceil.f32 %v2138_v44 }
   0xe   :  { %v2151_v50 = vcvt.f32.s32 %v1845_v43  ;;  %v1864_v52 = vfloor.f32 %v2138_v44  ;;  %vm1862_vm10 = vcmp.lt.s32.totalorder %v2138_v44, 0  ;;  %v1858_v53 = vceil.f32 %v2145_v46 }
   0xf   :  { %73 = vperm.xlu2 %1903, %v2107_v30   ;;  %v1859_v54 = vfloor.f32 %v2145_v46  ;;  %vm1857_vm11 = vcmp.lt.s32.totalorder %v2145_v46, 0  ;;  %v1870_v55 = vsel %vm1867_vm9, %v1868_v48, %v1869_v49  ;;  %v1883_v63 = vceil.f32 %v2166_v57  ;;  %v501_v49 = vld [vmem:[%s3105_s1 + $0x60] sm:$0xf] }
  0x10   :  { %67 = vperm.xlu1 %1902, %v2114_v32   ;;  %v1865_v56 = vsel %vm1862_vm10, %v1863_v51, %v1864_v52  ;;  %v2173_v60 = vcvt.f32.s32 %v1870_v55  ;;  %v1884_v0 = vfloor.f32 %v2166_v57  ;;  %vm1882_vm12 = vcmp.lt.s32.totalorder %v2166_v57, 0  ;;  %v2319_v51 = vld [vmem:[%s3106_s2] sm:$0x1f]  ;;  %v500_v52 = vld [vmem:[%s3105_s1 + $0x58] sm:$0xff] }
  0x11   :  { %61 = vperm.xlu0 %1901, %v2118_v35   ;;  %v1860_v58 = vsel %vm1857_vm11, %v1858_v53, %v1859_v54  ;;  %v2180_v62 = vcvt.f32.s32 %v1865_v56  ;;  %v1878_v5 = vceil.f32 %v2171_v59  ;;  %v1879_v8 = vfloor.f32 %v2171_v59 }
  0x12   :  { %v2184_v4 = vcvt.f32.s32 %v1860_v58  ;;  %vm1877_vm13 = vcmp.lt.s32.totalorder %v2171_v59, 0  ;;  %v1873_v9 = vceil.f32 %v2178_v61  ;;  %v1874_v10 = vfloor.f32 %v2178_v61 }
  0x13   :  { %vm1872_vm14 = vcmp.lt.s32.totalorder %v2178_v61, 0  ;;  %v1885_v11 = vsel %vm1882_vm12, %v1883_v63, %v1884_v0  ;;  %v1880_v12 = vsel %vm1877_vm13, %v1878_v5, %v1879_v8  ;;  %v1888_v21 = vceil.f32 %v2201_v17  ;;  %v497_v63 = vld [vmem:[%s3105_s1 + $0x40] sm:$0xff] }
  0x14   :  { %v1875_v13 = vsel %vm1872_vm14, %v1873_v9, %v1874_v10  ;;  %v2196_v16 = vcvt.f32.s32 %v1885_v11  ;;  %v2203_v19 = vcvt.f32.s32 %v1880_v12  ;;  %v1889_v23 = vfloor.f32 %v2201_v17  ;;  %v496_v9 = vld [vmem:[%s3105_s1 + $0x38] sm:$0xff]  ;;  %v495_v10 = vld [vmem:[%s3105_s1 + $0x30] sm:$0xff] }
  0x15   :  { %v2205_v20 = vcvt.f32.s32 %v1875_v13  ;;  %vm1887_vm15 = vcmp.lt.s32.totalorder %v2201_v17, 0  ;;  %v1995_v26 = vmov 1   ;;  %v1997_v28 = vmov 3  }
  0x16   :  { %v1890_v24 = vsel %vm1887_vm15, %v1888_v21, %v1889_v23  ;;  %vm551_vm2 = vcmask 1043456   ;;  %vm702_vm4 = vcmask 1044480   ;;  %vm669_vm6 = vcmask 39936   ;;  %v491_v21 = vld [vmem:[%s3105_s1 + $0x10] sm:$0xff]  ;;  %v489_v23 = vld [vmem:[%s3105_s1] sm:$0xff] }
  0x17   :  { %82 = vperm.xlu2 %1903, %v2140_v45   ;;  %v2213_v25 = vcvt.f32.s32 %v1890_v24  ;;  %1724 = vmatpush.msk.msra.mxu0 %vm551_vm2, %v501_v49  ;;  %vm502_vm13 = vcmask 818176  }
  0x18   :  { %79 = vperm.xlu1 %1902, %v2147_v47   ;;  %1790 = vmatpush.msk.msra.mxu3 %vm551_vm2, %v501_v49 }
  0x19   :  { %76 = vperm.xlu0 %1901, %v2151_v50   ;;  %1741 = vmatpush.msk.msra.mxu1 %vm702_vm4, %v2319_v51 }
  0x1a   :  { %559 = vmatpush.msra.mxu0 %v500_v52  ;;  %1791 = vmatpush.msra.mxu3 %v500_v52 }
  0x1f   :  { %91 = vperm.xlu2 %1903, %v2173_v60  }
  0x20   :  { %88 = vperm.xlu1 %1902, %v2180_v62  }
  0x21   :  { %85 = vperm.xlu0 %1901, %v2184_v4  }
  0x27   :  { %100 = vperm.xlu2 %1903, %v2196_v16  }
  0x28   :  { %97 = vperm.xlu1 %1902, %v2203_v19  }
  0x29   :  { %94 = vperm.xlu0 %1901, %v2205_v20  }
  0x2f   :  { %1905 = vset.pattern.permute.xlu2 %v1995_v26 }
  0x30   :  { %1904 = vset.pattern.permute.xlu1 %v1995_v26  ;;  %157 = vperm.xlu2 %1905, %v2118_v35  }
  0x31   :  { %103 = vperm.xlu0 %1901, %v2213_v25   ;;  %154 = vperm.xlu1 %1904, %v2088_v22  }
  0x38   :  { %166 = vperm.xlu2 %1905, %v2079_v15  }
  0x39   :  { %641 = vrot.lane.b32.xlu0 %v2046_v2, %s1996_s0  ;;  %163 = vperm.xlu1 %1904, %v2114_v32   ;;  %v1998_v2 = vmov 2  }
  0x3a   :  { %1909 = vset.pattern.permute.xlu0 %v1997_v28 }
  0x40   :  { %172 = vperm.xlu2 %1905, %v2151_v50  }
  0x41   :  { %643 = vrot.lane.b32.xlu0 %v2065_v7, %s1996_s0  ;;  %169 = vperm.xlu1 %1904, %v2107_v30  }
  0x48   :  { %181 = vperm.xlu2 %1905, %v2184_v4  }
  0x49   :  { %645 = vrot.lane.b32.xlu0 %v2041_v1, %s1996_s0  ;;  %178 = vperm.xlu1 %1904, %v2140_v45  }
  0x50   :  { %637 = vrot.lane.b32.xlu2 %v2051_v3, %s1996_s0 }
  0x51   :  { %647 = vrot.lane.b32.xlu0 %v2060_v6, %s1996_s0  ;;  %187 = vperm.xlu1 %1904, %v2173_v60  }
  0x58   :  { %193 = vperm.xlu2 %1905, %v2203_v19  }
  0x59   :  { %649 = vrot.lane.b32.xlu0 %v2112_v31, %s1996_s0  ;;  %639 = vrot.lane.b32.xlu1 %v2077_v14, %s1996_s0 }
  0x5a   :  { %1906 = vset.pattern.permute.xlu1 %v1998_v2 }
  0x60   :  { %1907 = vset.pattern.permute.xlu2 %v1997_v28 }
  0x61   :  { %651 = vrot.lane.b32.xlu0 %v2105_v29, %s1996_s0  ;;  %266 = vperm.xlu1 %1906, %v2088_v22   ;;  %v2248_v1 = vpop.permute.xlu2 %70 }
  0x62   :  { %378 = vperm.xlu2 %1907, %v2088_v22  }
  0x69   :  { %393 = vperm.xlu0 %1909, %v2107_v30   ;;  %269 = vperm.xlu1 %1906, %v2118_v35   ;;  %v2253_v3 = vpop.permute.xlu2 %73 }
  0x6a   :  { %381 = vperm.xlu2 %1907, %v2118_v35   ;;  %v55_v35 = vlaneseq }
  0x6c   :  { %v2297_v37 = vand.u32 127, %v55_v35 }
  0x71   :  { %396 = vperm.xlu0 %1909, %v2151_v50   ;;  %272 = vperm.xlu1 %1906, %v2083_v18   ;;  %v2258_v6 = vpop.permute.xlu2 %82 }
  0x72   :  { %384 = vperm.xlu2 %1907, %v2083_v18  }
  0x79   :  { %1912 = vset.pattern.permute.xlu0 %v1995_v26  ;;  %275 = vperm.xlu1 %1906, %v2114_v32   ;;  %v2263_v7 = vpop.permute.xlu2 %91 }
  0x7a   :  { %160 = vperm.xlu0 %1912, %v2083_v18   ;;  %v2266_v14 = vpop.permute.xlu1 %64  ;;  %387 = vperm.xlu2 %1907, %v2114_v32  }
  0x7b   :  { %v2269_v22 = vpop.permute.xlu0 %58 }
  0x7c   :  { %vm105_vm8 = vcmp.eq.s32.totalorder %v2269_v22, %v2297_v37 }
  0x81   :  { %278 = vperm.xlu1 %1906, %v2079_v15   ;;  %v2272_v29 = vpop.permute.xlu2 %100 }
  0x82   :  { %175 = vperm.xlu0 %1912, %v2147_v47   ;;  %v2275_v31 = vpop.permute.xlu1 %67  ;;  %390 = vperm.xlu2 %1907, %v2079_v15  }
  0x83   :  { %v2278_v33 = vpop.permute.xlu0 %61 }
  0x84   :  { %vm106_vm11 = vcmp.eq.s32.totalorder %v2278_v33, %v2297_v37 }
  0x89   :  { %281 = vperm.xlu1 %1906, %v2107_v30  }
  0x8a   :  { %184 = vperm.xlu0 %1912, %v2180_v62   ;;  %v2282_v18 = vpop.permute.xlu1 %79  ;;  %1908 = vset.pattern.permute.xlu2 %v1998_v2  ;;  %v2285_v32 = vpop.permute.xlu2 %157 }
  0x8b   :  { %v77_v34 = vpop.permute.xlu0 %76  ;;  %299 = vperm.xlu2 %1908, %v2173_v60   ;;  %vm202_vm12 = vcmp.eq.s32.totalorder %v2285_v32, %v2297_v37 }
  0x8c   :  { %vm111_vm0 = vcmp.eq.s32.totalorder %v77_v34, %v2297_v37 }
  0x91   :  { %1910 = vset.pattern.permute.xlu1 %v1997_v28 }
  0x92   :  { %190 = vperm.xlu0 %1912, %v2205_v20   ;;  %v2290_v15 = vpop.permute.xlu1 %88  ;;  %411 = vperm.xlu1 %1910, %v2173_v60   ;;  %v2293_v30 = vpop.permute.xlu2 %166  ;;  %v499_v60 = vld [vmem:[%s3105_s1 + $0x50] sm:$0xff] }
  0x93   :  { %v86_v36 = vpop.permute.xlu0 %85  ;;  %653 = vrot.lane.b32.xlu2 %v2100_v27, %s1996_s0  ;;  %v1999_v27 = vmov 0.0   ;;  %560 = vmatpush.msra.mxu0 %v499_v60 }
  0x94   :  { %v1666_v41 = vsel %vm111_vm0, 1.0, %v1999_v27  ;;  %vm114_vm3 = vcmp.eq.s32.totalorder %v86_v36, %v2297_v37  ;;  %1792 = vmatpush.msra.mxu3 %v499_v60  ;;  %v1661_v60 = vsel %vm106_vm11, 1.0, %v1999_v27  ;;  %vm107_vm0 = vcmp.eq.s32.totalorder %v2266_v14, %v2297_v37 }
  0x95   :  { %v1669_v55 = vsel %vm114_vm3, 1.0, %v1999_v27 }
  0x9a   :  { %196 = vperm.xlu0 %1912, %v2196_v16   ;;  %v2301_v38 = vpop.permute.xlu1 %97  ;;  %1911 = vset.pattern.permute.xlu1 %v1998_v2  ;;  %v173_v39 = vpop.permute.xlu2 %172 }
  0x9b   :  { %v2304_v40 = vpop.permute.xlu0 %94  ;;  %vm207_vm1 = vcmp.eq.s32.totalorder %v173_v39, %v2297_v37  ;;  %302 = vperm.xlu2 %1908, %v2205_v20   ;;  %284 = vperm.xlu1 %1911, %v2151_v50  }
  0x9c   :  { %v1682_v43 = vsel %vm207_vm1, 1.0, %v1999_v27 }
  0x9d   :  { %v2311_v48 = vadd.f32 %v1682_v43, %v1666_v41 }
  0xa2   :  { %1917 = vset.pattern.permute.xlu0 %v1998_v2  ;;  %v182_v50 = vpop.permute.xlu2 %181 }
  0xa3   :  { %287 = vperm.xlu0 %1917, %v2147_v47   ;;  %v2329_v53 = vpop.permute.xlu0 %103  ;;  %vm210_vm5 = vcmp.eq.s32.totalorder %v182_v50, %v2297_v37  ;;  %655 = vrot.lane.b32.xlu2 %v2145_v46, %s1996_s0  ;;  %v2334_v54 = vpop.permute.xlu1 %154  ;;  %v498_v46 = vld [vmem:[%s3105_s1 + $0x48] sm:$0xff] }
  0xa4   :  { %v1685_v56 = vsel %vm210_vm5, 1.0, %v1999_v27  ;;  %1913 = vset.pattern.permute.xlu1 %v1997_v28  ;;  %1915 = vset.pattern.permute.xlu2 %v1997_v28  ;;  %vm201_vm7 = vcmp.eq.s32.totalorder %v2334_v54, %v2297_v37  ;;  %vm108_vm5 = vcmp.eq.s32.totalorder %v2275_v31, %v2297_v37 }
  0xa5   :  { %v2340_v58 = vadd.f32 %v1685_v56, %v1669_v55  ;;  %414 = vperm.xlu1 %1913, %v2205_v20   ;;  %561 = vmatpush.msra.mxu0 %v498_v46  ;;  %v492_v20 = vld [vmem:[%s3105_s1 + $0x18] sm:$0xff] }
  0xa6   :  { %1793 = vmatpush.msra.mxu3 %v498_v46  ;;  %v1677_v46 = vsel %vm202_vm12, 1.0, %v1999_v27 }
  0xa7   :  { %562 = vmatpush.msra.mxu0 %v497_v63 }
  0xa8   :  { %1794 = vmatpush.msra.mxu3 %v497_v63 }
  0xa9   :  { %563 = vmatpush.msra.mxu0 %v496_v9 }
  0xaa   :  { %v638_v0 = vpop.permute.xlu2 %637  ;;  %1795 = vmatpush.msra.mxu3 %v496_v9 }
  0xab   :  { %659 = vrot.lane.b32.xlu0 %v2133_v42, %s1996_s0  ;;  %399 = vperm.xlu2 %1915, %v2147_v47   ;;  %v2355_v5 = vpop.permute.xlu1 %163  ;;  %v2357_v8 = vpop.permute.xlu0 %641  ;;  %v494_v42 = vld [vmem:[%s3105_s1 + $0x28] sm:$0xff]  ;;  %v493_v47 = vld [vmem:[%s3105_s1 + $0x20] sm:$0xff] }
  0xac   :  { %1742 = vmatmul.msk.f32.vlgmr.msra.gmra.mxu1 %vm669_vm6, %v638_v0  ;;  %564 = vmatpush.msra.mxu0 %v495_v10  ;;  %v250_v0 = vadd.f32 %v1677_v46, %v1661_v60  ;;  %vm204_vm3 = vcmp.eq.s32.totalorder %v2355_v5, %v2297_v37 }
  0xad   :  { %1914 = vset.pattern.permute.xlu1 %v1998_v2  ;;  %1796 = vmatpush.msra.mxu3 %v495_v10 }
  0xae   :  { %305 = vperm.xlu1 %1914, %v2203_v19   ;;  %565 = vmatpush.msra.mxu0 %v494_v42 }
  0xaf   :  { %1797 = vmatpush.msra.mxu3 %v494_v42 }
  0xb0   :  { %566 = vmatpush.msra.mxu0 %v493_v47 }
  0xb1   :  { %1798 = vmatpush.msra.mxu3 %v493_v47  ;;  %v1662_v47 = vsel %vm107_vm0, 1.0, %v1999_v27 }
  0xb2   :  { %v2374_v11 = vpop.permute.xlu2 %193  ;;  %567 = vmatpush.msra.mxu0 %v492_v20 }
  0xb3   :  { %657 = vrot.lane.b32.xlu2 %v2138_v44, %s1996_s0  ;;  %v2378_v12 = vpop.permute.xlu1 %169  ;;  %v2380_v13 = vpop.permute.xlu0 %643  ;;  %311 = vperm.xlu0 %1917, %v2213_v25   ;;  %v490_v44 = vld [vmem:[%s3105_s1 + $0x8] sm:$0xff] }
  0xb4   :  { %1919 = vset.pattern.permute.xlu2 %v1998_v2  ;;  %568 = vmatpush.msra.mxu0 %v491_v21 }
  0xb5   :  { %1799 = vmatpush.msra.mxu3 %v492_v20  ;;  %v1679_v20 = vsel %vm204_vm3, 1.0, %v1999_v27 }
  0xb6   :  { %1916 = vset.pattern.permute.xlu1 %v1997_v28  ;;  %569 = vmatpush.msra.mxu0 %v490_v44 }
  0xb7   :  { %417 = vperm.xlu1 %1916, %v2203_v19   ;;  %1800 = vmatpush.msra.mxu3 %v491_v21 }
  0xb8   :  { %570 = vmatpush.msra.mxu0 %v489_v23 }
  0xb9   :  { %1801 = vmatpush.msra.mxu3 %v490_v44 }
  0xbb   :  { %308 = vperm.xlu2 %1919, %v2196_v16   ;;  %v2399_v24 = vpop.permute.xlu1 %178  ;;  %v2401_v34 = vpop.permute.xlu0 %645  ;;  %1927 = vset.pattern.permute.xlu0 %v1997_v28 }
  0xbc   :  { %v379_v19 = vpop.permute.xlu2 %378  ;;  %408 = vperm.xlu0 %1927, %v2180_v62   ;;  %1802 = vmatpush.msra.mxu3 %v489_v23  ;;  %v1663_v23 = vsel %vm108_vm5, 1.0, %v1999_v27 }
  0xbd   :  { %vm425_vm9 = vcmp.eq.s32.totalorder %v379_v19, %v2297_v37  ;;  %v252_v31 = vadd.f32 %v1679_v20, %v1663_v23 }
  0xbe   :  { %1803 = vmatpush.msk.msrb.mxu3 %vm702_vm4, %v2319_v51  ;;  %v1708_v22 = vsel %vm425_vm9, 1.0, %v1999_v27 }
  0xbf   :  { %1918 = vset.pattern.permute.xlu1 %v1998_v2 }
  0xc0   :  { %290 = vperm.xlu1 %1918, %v2140_v45  }
  0xc3   :  { %1921 = vset.pattern.permute.xlu2 %v1997_v28  ;;  %v2410_v35 = vpop.permute.xlu1 %187  ;;  %v648_v36 = vpop.permute.xlu0 %647 }
  0xc4   :  { %420 = vperm.xlu2 %1921, %v2196_v16   ;;  %v382_v39 = vpop.permute.xlu2 %381  ;;  %v1676_v16 = vsel %vm201_vm7, 1.0, %v1999_v27  ;;  %vm212_vm12 = vcmp.eq.s32.totalorder %v2410_v35, %v2297_v37 }
  0xc5   :  { %vm426_vm14 = vcmp.eq.s32.totalorder %v382_v39, %v2297_v37 }
  0xc8   :  { %1920 = vset.pattern.permute.xlu1 %v1997_v28 }
  0xc9   :  { %402 = vperm.xlu1 %1920, %v2140_v45   ;;  %v1660_v45 = vsel %vm105_vm8, 1.0, %v1999_v27  ;;  %vm205_vm8 = vcmp.eq.s32.totalorder %v2293_v30, %v2297_v37 }
  0xca   :  { %v249_v52 = vadd.f32 %v1676_v16, %v1660_v45  ;;  %v1680_v39 = vsel %vm205_vm8, 1.0, %v1999_v27 }
  0xcb   :  { %v640_v41 = vpop.permute.xlu1 %639  ;;  %v2415_v43 = vpop.permute.xlu0 %649 }
  0xcc   :  { %1923 = vset.pattern.permute.xlu2 %v1998_v2  ;;  %v2418_v49 = vpop.permute.xlu2 %384  ;;  %1743 = vmatmul.msk.f32.gmra.mxu1 %vm669_vm6, %v640_v41 }
  0xcd   :  { %293 = vperm.xlu2 %1923, %v2184_v4   ;;  %vm427_vm4 = vcmp.eq.s32.totalorder %v2418_v49, %v2297_v37 }
  0xce   :  { %v1710_v21 = vsel %vm427_vm4, 1.0, %v1999_v27 }
  0xd1   :  { %1922 = vset.pattern.permute.xlu1 %v1995_v26 }
  0xd2   :  { %199 = vperm.xlu1 %1922, %v2213_v25  }
  0xd3   :  { %v267_v51 = vpop.permute.xlu1 %266  ;;  %v2431_v50 = vpop.permute.xlu0 %651 }
  0xd4   :  { %vm313_vm10 = vcmp.eq.s32.totalorder %v267_v51, %v2297_v37  ;;  %v2434_v54 = vpop.permute.xlu2 %387  ;;  %1744 = vmatmul.msk.f32.gmra.mxu1 %vm669_vm6, %v2357_v8 }
  0xd5   :  { %v1692_v26 = vsel %vm313_vm10, 1.0, %v1999_v27  ;;  %1925 = vset.pattern.permute.xlu2 %v1997_v28  ;;  %vm428_vm9 = vcmp.eq.s32.totalorder %v2434_v54, %v2297_v37  ;;  %vm109_vm10 = vcmp.eq.s32.totalorder %v2248_v1, %v2297_v37 }
  0xd6   :  { %v361_v55 = vadd.f32 %v1692_v26, %v249_v52  ;;  %423 = vperm.xlu2 %1925, %v2213_v25   ;;  %v1711_v41 = vsel %vm428_vm9, 1.0, %v1999_v27  ;;  %v1664_v16 = vsel %vm109_vm10, 1.0, %v1999_v27  ;;  %vm117_vm10 = vcmp.eq.s32.totalorder %v2304_v40, %v2297_v37 }
  0xd7   :  { %v253_v51 = vadd.f32 %v1680_v39, %v1664_v16 }
  0xd8   :  { %v473_v56 = vadd.f32 %v1708_v22, %v361_v55 }
  0xda   :  { %1924 = vset.pattern.permute.xlu1 %v1997_v28  ;;  %1725 = vmatmul.msk.f32.vlgmr.msra.gmra.mxu0 %vm502_vm13, %v473_v56 }
  0xdb   :  { %405 = vperm.xlu1 %1924, %v2184_v4   ;;  %v270_v63 = vpop.permute.xlu1 %269  ;;  %v2451_v33 = vpop.permute.xlu0 %393  ;;  %v1709_v4 = vsel %vm426_vm14, 1.0, %v1999_v27  ;;  %vm116_vm14 = vcmp.eq.s32.totalorder %v2263_v7, %v2297_v37 }
  0xdc   :  { %vm314_vm15 = vcmp.eq.s32.totalorder %v270_v63, %v2297_v37  ;;  %v2455_v25 = vpop.permute.xlu2 %390  ;;  %1745 = vmatmul.msk.f32.gmra.mxu1 %vm669_vm6, %v2380_v13  ;;  %v1671_v35 = vsel %vm116_vm14, 1.0, %v1999_v27  ;;  %vm430_vm5 = vcmp.eq.s32.totalorder %v2451_v33, %v2297_v37 }
  0xdd   :  { %v1693_v32 = vsel %vm314_vm15, 1.0, %v1999_v27  ;;  %vm206_vm15 = vcmp.eq.s32.totalorder %v2378_v12, %v2297_v37  ;;  %vm429_vm0 = vcmp.eq.s32.totalorder %v2455_v25, %v2297_v37 }
  0xde   :  { %v362_v28 = vadd.f32 %v1693_v32, %v250_v0  ;;  %1926 = vset.pattern.permute.xlu2 %v1998_v2  ;;  %v1681_v7 = vsel %vm206_vm15, 1.0, %v1999_v27  ;;  %v1712_v12 = vsel %vm429_vm0, 1.0, %v1999_v27 }
  0xdf   :  { %296 = vperm.xlu2 %1926, %v2180_v62  }
  0xe0   :  { %v474_v8 = vadd.f32 %v1709_v4, %v362_v28  ;;  %v1713_v4 = vsel %vm430_vm5, 1.0, %v1999_v27 }
  0xe2   :  { %1726 = vmatmul.msk.f32.gmra.mxu0 %vm502_vm13, %v474_v8 }
  0xe3   :  { %661 = vrot.lane.b32.xlu1 %v2178_v61, %s1996_s0  ;;  %v273_v9 = vpop.permute.xlu1 %272  ;;  %v2466_v10 = vpop.permute.xlu0 %396 }
  0xe4   :  { %1746 = vmatmul.msk.f32.gmra.mxu1 %vm669_vm6, %v2401_v34  ;;  %vm315_vm1 = vcmp.eq.s32.totalorder %v273_v9, %v2297_v37 }
  0xe5   :  { %v300_v42 = vpop.permute.xlu2 %299 }
  0xe7   :  { %665 = vrot.lane.b32.xlu2 %v2166_v57, %s1996_s0 }
  0xeb   :  { %663 = vrot.lane.b32.xlu1 %v2171_v59, %s1996_s0  ;;  %v276_v62 = vpop.permute.xlu1 %275  ;;  %v1694_v59 = vsel %vm315_vm1, 1.0, %v1999_v27  ;;  %vm324_vm1 = vcmp.eq.s32.totalorder %v300_v42, %v2297_v37 }
  0xec   :  { %v161_v2 = vpop.permute.xlu0 %160  ;;  %1747 = vmatmul.msk.f32.gmra.mxu1 %vm669_vm6, %v648_v36  ;;  %vm316_vm7 = vcmp.eq.s32.totalorder %v276_v62, %v2297_v37  ;;  %v1703_v54 = vsel %vm324_vm1, 1.0, %v1999_v27 }
  0xed   :  { %vm203_vm2 = vcmp.eq.s32.totalorder %v161_v2, %v2297_v37  ;;  %v654_v61 = vpop.permute.xlu2 %653  ;;  %v1695_v34 = vsel %vm316_vm7, 1.0, %v1999_v27  ;;  %vm431_vm7 = vcmp.eq.s32.totalorder %v2466_v10, %v2297_v37 }
  0xee   :  { %v1678_v13 = vsel %vm203_vm2, 1.0, %v1999_v27  ;;  %vm110_vm2 = vcmp.eq.s32.totalorder %v2253_v3, %v2297_v37  ;;  %v1714_v2 = vsel %vm431_vm7, 1.0, %v1999_v27 }
  0xef   :  { %v251_v57 = vadd.f32 %v1678_v13, %v1662_v47  ;;  %v1665_v55 = vsel %vm110_vm2, 1.0, %v1999_v27  ;;  %v1672_v47 = vsel %vm117_vm10, 1.0, %v1999_v27  ;;  %vm214_vm2 = vcmp.eq.s32.totalorder %v2374_v11, %v2297_v37 }
  0xf0   :  { %v254_v3 = vadd.f32 %v1681_v7, %v1665_v55 }
  0xf1   :  { %v363_v14 = vadd.f32 %v1694_v59, %v251_v57 }
  0xf3   :  { %667 = vrot.lane.b32.xlu1 %v2201_v17, %s1996_s0  ;;  %v279_v5 = vpop.permute.xlu1 %278  ;;  %v475_v44 = vadd.f32 %v1710_v21, %v363_v14  ;;  %v364_v17 = vadd.f32 %v1695_v34, %v252_v31 }
  0xf4   :  { %v2495_v19 = vpop.permute.xlu0 %175  ;;  %1748 = vmatmul.msk.f32.gmra.mxu1 %vm669_vm6, %v2415_v43  ;;  %vm317_vm11 = vcmp.eq.s32.totalorder %v279_v5, %v2297_v37 }
  0xf5   :  { %1727 = vmatmul.msk.f32.gmra.mxu0 %vm502_vm13, %v475_v44  ;;  %v2500_v36 = vpop.permute.xlu2 %302  ;;  %v476_v49 = vadd.f32 %v1711_v41, %v364_v17  ;;  %v1696_v45 = vsel %vm317_vm11, 1.0, %v1999_v27  ;;  %vm208_vm11 = vcmp.eq.s32.totalorder %v2495_v19, %v2297_v37  ;;  %v1689_v41 = vsel %vm214_vm2, 1.0, %v1999_v27 }
  0xf6   :  { %v365_v1 = vadd.f32 %v1696_v45, %v253_v51  ;;  %v1683_v13 = vsel %vm208_vm11, 1.0, %v1999_v27  ;;  %vm325_vm14 = vcmp.eq.s32.totalorder %v2500_v36, %v2297_v37  ;;  %vm209_vm11 = vcmp.eq.s32.totalorder %v2399_v24, %v2297_v37  ;;  %v1046_v24 = vld [vmem:[%s3107_s3 + $0x10] sm:$0xff] }
  0xf7   :  { %v1704_v14 = vsel %vm325_vm14, 1.0, %v1999_v27 }
  0xf8   :  { %v477_v26 = vadd.f32 %v1712_v12, %v365_v1 }
  0xfb   :  { %v282_v43 = vpop.permute.xlu1 %281 }
  0xfc   :  { %v2513_v30 = vpop.permute.xlu0 %184  ;;  %1749 = vmatmul.msk.f32.gmra.mxu1 %vm669_vm6, %v2431_v50  ;;  %v1687_v50 = vsel %vm212_vm12, 1.0, %v1999_v27  ;;  %vm318_vm3 = vcmp.eq.s32.totalorder %v282_v43, %v2297_v37  ;;  %vm112_vm12 = vcmp.eq.s32.totalorder %v2282_v18, %v2297_v37 }
  0xfd   :  { %1728 = vmatmul.msk.f32.gmra.mxu0 %vm502_vm13, %v476_v49  ;;  %v656_v52 = vpop.permute.xlu2 %655  ;;  %v260_v22 = vadd.f32 %v1687_v50, %v1671_v35  ;;  %v1697_v56 = vsel %vm318_vm3, 1.0, %v1999_v27  ;;  %vm118_vm3 = vcmp.eq.s32.totalorder %v2301_v38, %v2297_v37  ;;  %v1051_v50 = vld [vmem:[%s3107_s3 + $0x38] sm:$0xff] }
  0xfe   :  { %v366_v25 = vadd.f32 %v1697_v56, %v254_v3  ;;  %v1673_v43 = vsel %vm118_vm3, 1.0, %v1999_v27  ;;  %1113 = vmatpush.msra.mxu2 %v1051_v50  ;;  %v1048_v56 = vld [vmem:[%s3107_s3 + $0x20] sm:$0xff]  ;;  %v1684_v3 = vsel %vm209_vm11, 1.0, %v1999_v27  ;;  %vm1056_vm11 = vcmask 523264  }
  0xff   :  { %v372_v63 = vadd.f32 %v1703_v54, %v260_v22  ;;  %v262_v16 = vadd.f32 %v1689_v41, %v1673_v43  ;;  %v1049_v22 = vld [vmem:[%s3107_s3 + $0x28] sm:$0xff] }
 0x100   :  { %v478_v8 = vadd.f32 %v1713_v4, %v366_v25 }
 0x104   :  { %v191_v60 = vpop.permute.xlu0 %190  ;;  %v412_v46 = vpop.permute.xlu1 %411  ;;  %1750 = vmatmul.msk.f32.gmra.mxu1 %vm669_vm6, %v654_v61 }
 0x105   :  { %vm436_vm4 = vcmp.eq.s32.totalorder %v412_v46, %v2297_v37  ;;  %1729 = vmatmul.msk.f32.gmra.mxu0 %vm502_vm13, %v477_v26  ;;  %v400_v28 = vpop.permute.xlu2 %399  ;;  %vm213_vm8 = vcmp.eq.s32.totalorder %v191_v60, %v2297_v37  ;;  %v1047_v46 = vld [vmem:[%s3107_s3 + $0x18] sm:$0xff] }
 0x106   :  { %v1719_v0 = vsel %vm436_vm4, 1.0, %v1999_v27  ;;  %v1688_v61 = vsel %vm213_vm8, 1.0, %v1999_v27  ;;  %vm432_vm15 = vcmp.eq.s32.totalorder %v400_v28, %v2297_v37  ;;  %vm119_vm8 = vcmp.eq.s32.totalorder %v2272_v29, %v2297_v37  ;;  %v1050_v29 = vld [vmem:[%s3107_s3 + $0x30] sm:$0xff]  ;;  %v1044_v28 = vld [vmem:[%s3107_s3] sm:$0xff] }
 0x107   :  { %v484_v32 = vadd.f32 %v1719_v0, %v372_v63  ;;  %v261_v40 = vadd.f32 %v1688_v61, %v1672_v47  ;;  %v1715_v20 = vsel %vm432_vm15, 1.0, %v1999_v27  ;;  %v1674_v35 = vsel %vm119_vm8, 1.0, %v1999_v27  ;;  %1114 = vmatpush.msra.mxu2 %v1050_v29 }
 0x109   :  { %1736 = vmatmul.msk.f32.vlgmr.msra.gmra.mxu3 %vm502_vm13, %v484_v32  ;;  %v373_v23 = vadd.f32 %v1704_v14, %v261_v40  ;;  %1115 = vmatpush.msra.mxu2 %v1049_v22 }
 0x10a   :  { %1804 = vmatpush.msra.mxu3 %v1051_v50 }
 0x10b   :  { %1116 = vmatpush.msra.mxu2 %v1048_v56 }
 0x10c   :  { %v197_v9 = vpop.permute.xlu0 %196  ;;  %1751 = vmatmul.msk.f32.gmra.mxu1 %vm669_vm6, %v656_v52  ;;  %1805 = vmatpush.msra.mxu3 %v1050_v29 }
 0x10d   :  { %1730 = vmatmul.msk.f32.gmra.mxu0 %vm502_vm13, %v478_v8  ;;  %v285_v42 = vpop.permute.xlu1 %284  ;;  %v658_v57 = vpop.permute.xlu2 %657  ;;  %vm215_vm5 = vcmp.eq.s32.totalorder %v197_v9, %v2297_v37  ;;  %1117 = vmatpush.msra.mxu2 %v1047_v46 }
 0x10e   :  { %vm319_vm9 = vcmp.eq.s32.totalorder %v285_v42, %v2297_v37  ;;  %v1690_v52 = vsel %vm215_vm5, 1.0, %v1999_v27  ;;  %1806 = vmatpush.msra.mxu3 %v1049_v22  ;;  %vm211_vm5 = vcmp.eq.s32.totalorder %v2513_v30, %v2297_v37 }
 0x10f   :  { %v1698_v33 = vsel %vm319_vm9, 1.0, %v1999_v27  ;;  %v263_v12 = vadd.f32 %v1690_v52, %v1674_v35  ;;  %1118 = vmatpush.msra.mxu2 %v1046_v24 }
 0x110   :  { %v367_v62 = vadd.f32 %v1698_v33, %v2311_v48  ;;  %v1667_v48 = vsel %vm112_vm12, 1.0, %v1999_v27  ;;  %1807 = vmatpush.msra.mxu3 %v1048_v56  ;;  %vm113_vm12 = vcmp.eq.s32.totalorder %v2258_v6, %v2297_v37  ;;  %v1045_v6 = vld [vmem:[%s3107_s3 + $0x8] sm:$0xff]  ;;  %s2000_s3 = smov 63  }
 0x111   :  { %v256_v18 = vadd.f32 %v1683_v13, %v1667_v48  ;;  %v1668_v0 = vsel %vm113_vm12, 1.0, %v1999_v27  ;;  %1119 = vmatpush.msra.mxu2 %v1045_v6 }
 0x112   :  { %v479_v10 = vadd.f32 %v1714_v2, %v367_v62  ;;  %1808 = vmatpush.msra.mxu3 %v1047_v46  ;;  %v257_v32 = vadd.f32 %v1684_v3, %v1668_v0 }
 0x113   :  { %1120 = vmatpush.msra.mxu2 %v1044_v28 }
 0x114   :  { %1752 = vmatmul.msk.f32.gmra.mxu1 %vm669_vm6, %v658_v57  ;;  %1809 = vmatpush.msra.mxu3 %v1046_v24 }
 0x115   :  { %1731 = vmatmul.msk.f32.gmra.mxu0 %vm502_vm13, %v479_v10  ;;  %v288_v59 = vpop.permute.xlu0 %287  ;;  %v309_v39 = vpop.permute.xlu2 %308 }
 0x116   :  { %vm320_vm0 = vcmp.eq.s32.totalorder %v288_v59, %v2297_v37  ;;  %vm327_vm9 = vcmp.eq.s32.totalorder %v309_v39, %v2297_v37  ;;  %1810 = vmatpush.msra.mxu3 %v1045_v6 }
 0x117   :  { %v1699_v21 = vsel %vm320_vm0, 1.0, %v1999_v27  ;;  %v415_v5 = vpop.permute.xlu1 %414  ;;  %v1706_v7 = vsel %vm327_vm9, 1.0, %v1999_v27  ;;  %vm120_vm0 = vcmp.eq.s32.totalorder %v2329_v53, %v2297_v37 }
 0x118   :  { %v368_v44 = vadd.f32 %v1699_v21, %v256_v18  ;;  %vm437_vm1 = vcmp.eq.s32.totalorder %v415_v5, %v2297_v37  ;;  %v375_v26 = vadd.f32 %v1706_v7, %v263_v12  ;;  %1811 = vmatpush.msra.mxu3 %v1044_v28  ;;  %v1675_v61 = vsel %vm120_vm0, 1.0, %v1999_v27 }
 0x119   :  { %v1720_v34 = vsel %vm437_vm1, 1.0, %v1999_v27 }
 0x11a   :  { %v485_v19 = vadd.f32 %v1720_v34, %v373_v23  ;;  %v480_v31 = vadd.f32 %v1715_v20, %v368_v44  ;;  %v1686_v20 = vsel %vm211_vm5, 1.0, %v1999_v27 }
 0x11c   :  { %1737 = vmatmul.msk.f32.gmra.mxu3 %vm502_vm13, %v485_v19 }
 0x11d   :  { %1732 = vmatmul.msk.f32.gmra.mxu0 %vm502_vm13, %v480_v31  ;;  %v660_v36 = vpop.permute.xlu0 %659 }
 0x11e   :  { %1753 = vmatmul.msk.f32.gmra.mxu1 %vm669_vm6, %v660_v36  ;;  %v421_v1 = vpop.permute.xlu2 %420 }
 0x11f   :  { %vm439_vm10 = vcmp.eq.s32.totalorder %v421_v1, %v2297_v37 }
 0x120   :  { %v306_v17 = vpop.permute.xlu1 %305  ;;  %v1722_v54 = vsel %vm439_vm10, 1.0, %v1999_v27 }
 0x121   :  { %vm326_vm4 = vcmp.eq.s32.totalorder %v306_v17, %v2297_v37  ;;  %v487_v60 = vadd.f32 %v1722_v54, %v375_v26 }
 0x122   :  { %v1705_v49 = vsel %vm326_vm4, 1.0, %v1999_v27 }
 0x123   :  { %v374_v51 = vadd.f32 %v1705_v49, %v262_v16 }
 0x125   :  { %v312_v62 = vpop.permute.xlu0 %311 }
 0x126   :  { %vm328_vm2 = vcmp.eq.s32.totalorder %v312_v62, %v2297_v37 }
 0x127   :  { %v294_v63 = vpop.permute.xlu2 %293  ;;  %v1707_v57 = vsel %vm328_vm2, 1.0, %v1999_v27 }
 0x128   :  { %vm322_vm4 = vcmp.eq.s32.totalorder %v294_v63, %v2297_v37 }
 0x129   :  { %v418_v45 = vpop.permute.xlu1 %417  ;;  %v1701_v48 = vsel %vm322_vm4, 1.0, %v1999_v27  ;;  %v723_v19 = vpop.f32.mrf.mxu1 }
 0x12a   :  { %vm438_vm7 = vcmp.eq.s32.totalorder %v418_v45, %v2297_v37  ;;  %v370_v14 = vadd.f32 %v1701_v48, %v2340_v58 }
 0x12b   :  { %v1721_v11 = vsel %vm438_vm7, 1.0, %v1999_v27  ;;  %vm115_vm7 = vcmp.eq.s32.totalorder %v2290_v15, %v2297_v37 }
 0x12c   :  { %v486_v38 = vadd.f32 %v1721_v11, %v374_v51  ;;  %v1670_v30 = vsel %vm115_vm7, 1.0, %v1999_v27 }
 0x12d   :  { %v259_v34 = vadd.f32 %v1686_v20, %v1670_v30 }
 0x12e   :  { %1738 = vmatmul.msk.f32.gmra.mxu3 %vm502_vm13, %v486_v38  ;;  %v409_v21 = vpop.permute.xlu0 %408 }
 0x12f   :  { %vm435_vm10 = vcmp.eq.s32.totalorder %v409_v21, %v2297_v37 }
 0x130   :  { %v424_v33 = vpop.permute.xlu2 %423  ;;  %v1718_v31 = vsel %vm435_vm10, 1.0, %v1999_v27 }
 0x131   :  { %vm440_vm1 = vcmp.eq.s32.totalorder %v424_v33, %v2297_v37 }
 0x132   :  { %v291_v55 = vpop.permute.xlu1 %290  ;;  %v1723_v13 = vsel %vm440_vm1, 1.0, %v1999_v27 }
 0x133   :  { %vm321_vm14 = vcmp.eq.s32.totalorder %v291_v55, %v2297_v37 }
 0x134   :  { %v1700_v25 = vsel %vm321_vm14, 1.0, %v1999_v27 }
 0x135   :  { %v369_v8 = vadd.f32 %v1700_v25, %v257_v32 }
 0x136   :  { %1739 = vmatmul.msk.f32.gmra.mxu3 %vm502_vm13, %v487_v60 }
 0x139   :  { %v297_v40 = vpop.permute.xlu2 %296 }
 0x13a   :  { %vm323_vm8 = vcmp.eq.s32.totalorder %v297_v40, %v2297_v37 }
 0x13b   :  { %v403_v4 = vpop.permute.xlu1 %402  ;;  %v1702_v23 = vsel %vm323_vm8, 1.0, %v1999_v27 }
 0x13c   :  { %vm433_vm15 = vcmp.eq.s32.totalorder %v403_v4, %v2297_v37  ;;  %v371_v58 = vadd.f32 %v1702_v23, %v259_v34 }
 0x13d   :  { %v1716_v9 = vsel %vm433_vm15, 1.0, %v1999_v27 }
 0x13e   :  { %v481_v42 = vadd.f32 %v1716_v9, %v369_v8  ;;  %v483_v39 = vadd.f32 %v1718_v31, %v371_v58 }
 0x140   :  { %1733 = vmatmul.msk.f32.gmra.mxu0 %vm502_vm13, %v481_v42 }
 0x141   :  { %v666_v15 = vpop.permute.xlu2 %665 }
 0x144   :  { %v200_v2 = vpop.permute.xlu1 %199 }
 0x145   :  { %vm216_vm3 = vcmp.eq.s32.totalorder %v200_v2, %v2297_v37 }
 0x146   :  { %v1691_v10 = vsel %vm216_vm3, 1.0, %v1999_v27 }
 0x147   :  { %v264_v47 = vadd.f32 %v1691_v10, %v1675_v61 }
 0x149   :  { %v376_v53 = vadd.f32 %v1707_v57, %v264_v47  ;;  %v726_v49 = vpop.f32.mrf.mxu1 }
 0x14b   :  { %v488_v59 = vadd.f32 %v1723_v13, %v376_v53 }
 0x14d   :  { %v406_v18 = vpop.permute.xlu1 %405  ;;  %1740 = vmatmul.msk.f32.gmra.mxu3 %vm502_vm13, %v488_v59 }
 0x14e   :  { %vm434_vm9 = vcmp.eq.s32.totalorder %v406_v18, %v2297_v37 }
 0x14f   :  { %v1717_v5 = vsel %vm434_vm9, 1.0, %v1999_v27 }
 0x150   :  { %v482_v44 = vadd.f32 %v1717_v5, %v370_v14 }
 0x151   :  { %v729_v38 = vpop.f32.mrf.mxu1 }
 0x152   :  { %1734 = vmatmul.msk.f32.gmra.mxu0 %vm502_vm13, %v482_v44 }
 0x155   :  { %v662_v36 = vpop.permute.xlu1 %661  ;;  %1756 = vmatmul.msk.f32.vlgmr.msrb.gmra.mxu3 %vm669_vm6, %v666_v15 }
 0x156   :  { %1754 = vmatmul.msk.f32.gmra.mxu1 %vm669_vm6, %v662_v36 }
 0x157   :  { %v2662_v17 = vpop.f32.mrf.mxu0 }
 0x158   :  { %v2665_v41 = vadd.f32 %v723_v19, %v2662_v17  ;;  %v787_v37 = vmul.f32 %v2662_v17, %v2662_v17 }
 0x159   :  { %v732_v52 = vpop.f32.mrf.mxu1 }
 0x15a   :  { %1735 = vmatmul.msk.f32.gmra.mxu0 %vm502_vm13, %v483_v39  ;;  %819 = vrot.lane.b32.xlu2 %v787_v37, %s2000_s3  ;;  %v1028_v27 = vmax.f32 %v2665_v41, 0.0  ;;  %vm1206_vm13 = vcmask 261120  }
 0x15c   :  { %1758 = vmatmul.msk.f32.vlgmr.msra.gmra.mxu2 %vm1056_vm11, %v1028_v27 }
 0x15d   :  { %v664_v43 = vpop.permute.xlu1 %663 }
 0x15e   :  { %1755 = vmatmul.msk.f32.gmra.mxu1 %vm669_vm6, %v664_v43 }
 0x15f   :  { %v2674_v16 = vpop.f32.mrf.mxu0 }
 0x160   :  { %v2677_v45 = vadd.f32 %v726_v49, %v2674_v16  ;;  %v788_v51 = vmul.f32 %v2674_v16, %v2674_v16 }
 0x161   :  { %v735_v54 = vpop.f32.mrf.mxu1 }
 0x162   :  { %821 = vrot.lane.b32.xlu0 %v788_v51, %s2000_s3  ;;  %v1029_v1 = vmax.f32 %v2677_v45, 0.0 }
 0x164   :  { %1759 = vmatmul.msk.f32.gmra.mxu2 %vm1056_vm11, %v1029_v1 }
 0x165   :  { %v668_v11 = vpop.permute.xlu1 %667 }
 0x166   :  { %1757 = vmatmul.msk.f32.gmra.mxu3 %vm669_vm6, %v668_v11  ;;  %vm867_vm6 = vcmask 64512  }
 0x169   :  { %v738_v60 = vpop.f32.mrf.mxu1 }
 0x171   :  { %v741_v25 = vpop.f32.mrf.mxu1 }
 0x172   :  { %v2685_v50 = vpop.f32.mrf.mxu0 }
 0x173   :  { %v2688_v35 = vadd.f32 %v729_v38, %v2685_v50  ;;  %v789_v28 = vmul.f32 %v2685_v50, %v2685_v50 }
 0x175   :  { %v1030_v7 = vmax.f32 %v2688_v35, 0.0 }
 0x177   :  { %1760 = vmatmul.msk.f32.gmra.mxu2 %vm1056_vm11, %v1030_v7 }
 0x179   :  { %v744_v8 = vpop.f32.mrf.mxu1 }
 0x17a   :  { %v2692_v29 = vpop.f32.mrf.mxu0 }
 0x17b   :  { %v2695_v12 = vadd.f32 %v732_v52, %v2692_v29  ;;  %v790_v61 = vmul.f32 %v2692_v29, %v2692_v29 }
 0x17d   :  { %v1031_v22 = vmax.f32 %v2695_v12, 0.0 }
 0x17f   :  { %1761 = vmatmul.msk.f32.gmra.mxu2 %vm1056_vm11, %v1031_v22 }
 0x181   :  { %v747_v10 = vpop.f32.mrf.mxu1 }
 0x182   :  { %v2699_v26 = vpop.f32.mrf.mxu0 }
 0x183   :  { %v2702_v55 = vadd.f32 %v735_v54, %v2699_v26  ;;  %v791_v40 = vmul.f32 %v2699_v26, %v2699_v26 }
 0x185   :  { %v1032_v56 = vmax.f32 %v2702_v55, 0.0 }
 0x187   :  { %1762 = vmatmul.msk.f32.gmra.mxu2 %vm1056_vm11, %v1032_v56 }
 0x189   :  { %v750_v57 = vpop.f32.mrf.mxu1 }
 0x18a   :  { %v2706_v46 = vpop.f32.mrf.mxu0 }
 0x18b   :  { %v2709_v3 = vadd.f32 %v738_v60, %v2706_v46  ;;  %v792_v21 = vmul.f32 %v2706_v46, %v2706_v46 }
 0x18c   :  { %v2711_v24 = vpop.f32.mrf.mxu3 }
 0x18d   :  { %v798_v63 = vmul.f32 %v2711_v24, %v2711_v24  ;;  %v1033_v0 = vmax.f32 %v2709_v3, 0.0 }
 0x18f   :  { %1763 = vmatmul.msk.f32.gmra.mxu2 %vm1056_vm11, %v1033_v0  ;;  %841 = vrot.lane.b32.xlu1 %v798_v63, %s2000_s3 }
 0x191   :  { %v753_v20 = vpop.f32.mrf.mxu1 }
 0x192   :  { %v2718_v6 = vpop.f32.mrf.mxu0 }
 0x193   :  { %v2721_v32 = vadd.f32 %v741_v25, %v2718_v6  ;;  %v793_v27 = vmul.f32 %v2718_v6, %v2718_v6 }
 0x195   :  { %v1034_v4 = vmax.f32 %v2721_v32, 0.0 }
 0x197   :  { %1764 = vmatmul.msk.f32.gmra.mxu2 %vm1056_vm11, %v1034_v4  ;;  %823 = vrot.lane.b32.xlu1 %v789_v28, %s2000_s3 }
 0x19a   :  { %v2728_v9 = vpop.f32.mrf.mxu0 }
 0x19b   :  { %v2731_v42 = vadd.f32 %v744_v8, %v2728_v9  ;;  %v794_v5 = vmul.f32 %v2728_v9, %v2728_v9  ;;  %v756_v30 = vpop.f32.mrf.mxu1 }
 0x19c   :  { %v2801_v1 = vadd.f32 %v756_v30, %v2711_v24 }
 0x19d   :  { %v1035_v33 = vmax.f32 %v2731_v42, 0.0 }
 0x19e   :  { %v1039_v7 = vmax.f32 %v2801_v1, 0.0 }
 0x19f   :  { %v2734_v62 = vpop.f32.mrf.mxu3  ;;  %1765 = vmatmul.msk.f32.gmra.mxu2 %vm1056_vm11, %v1035_v33  ;;  %v2828_v33 = vld [vmem:[%s3108_s4] ss:$0 sm:$0xff]  ;;  %s2001_s4 = smov 119  }
 0x1a0   :  { %v799_v2 = vmul.f32 %v2734_v62, %v2734_v62 }
 0x1a2   :  { %843 = vrot.lane.b32.xlu2 %v799_v2, %s2000_s3 }
 0x1aa   :  { %825 = vrot.lane.b32.xlu2 %v790_v61, %s2000_s3 }
 0x1b1   :  { %v2743_v47 = vpop.f32.mrf.mxu3 }
 0x1b2   :  { %v800_v13 = vmul.f32 %v2743_v47, %v2743_v47 }
 0x1b4   :  { %845 = vrot.lane.b32.xlu0 %v800_v13, %s2000_s3  ;;  %v820_v4 = vpop.permute.xlu2 %819 }
 0x1b5   :  { %v868_v61 = vsel %vm867_vm6, %v820_v4, 0.0 }
 0x1b9   :  { %v2748_v53 = vpop.f32.mrf.mxu3 }
 0x1ba   :  { %v801_v48 = vmul.f32 %v2748_v53, %v2748_v53 }
 0x1bc   :  { %827 = vrot.lane.b32.xlu0 %v791_v40, %s2000_s3  ;;  %847 = vrot.lane.b32.xlu1 %v801_v48, %s2000_s3 }
 0x1bd   :  { %v2756_v59 = vpop.f32.mrf.mxu0 }
 0x1be   :  { %v2759_v18 = vadd.f32 %v747_v10, %v2756_v59  ;;  %v795_v44 = vmul.f32 %v2756_v59, %v2756_v59 }
 0x1c0   :  { %v1036_v14 = vmax.f32 %v2759_v18, 0.0 }
 0x1c2   :  { %1766 = vmatmul.msk.f32.gmra.mxu2 %vm1056_vm11, %v1036_v14 }
 0x1c4   :  { %829 = vrot.lane.b32.xlu1 %v792_v21, %s2000_s3  ;;  %833 = vrot.lane.b32.xlu0 %v794_v5, %s2000_s3 }
 0x1cc   :  { %835 = vrot.lane.b32.xlu1 %v795_v44, %s2000_s3 }
 0x1cf   :  { %v2772_v23 = vpop.f32.mrf.mxu0 }
 0x1d0   :  { %v2775_v34 = vadd.f32 %v750_v57, %v2772_v23  ;;  %v2777_v15 = vpop.f32.mrf.mxu3  ;;  %v796_v52 = vmul.f32 %v2772_v23, %v2772_v23 }
 0x1d1   :  { %v802_v58 = vmul.f32 %v2777_v15, %v2777_v15 }
 0x1d2   :  { %v1037_v19 = vmax.f32 %v2775_v34, 0.0 }
 0x1d3   :  { %v759_v31 = vpop.f32.mrf.mxu1  ;;  %849 = vrot.lane.b32.xlu2 %v802_v58, %s2000_s3 }
 0x1d4   :  { %1767 = vmatmul.msk.f32.gmra.mxu2 %vm1056_vm11, %v1037_v19  ;;  %v2814_v22 = vadd.f32 %v759_v31, %v2734_v62  ;;  %v822_v57 = vpop.permute.xlu0 %821 }
 0x1d5   :  { %v871_v14 = vsel %vm867_vm6, %v822_v57, 0.0 }
 0x1d6   :  { %v1040_v63 = vmax.f32 %v2814_v22, 0.0 }
 0x1d7   :  { %v2784_v36 = vpop.f32.mrf.mxu0 }
 0x1d8   :  { %v2787_v39 = vadd.f32 %v753_v20, %v2784_v36  ;;  %v797_v37 = vmul.f32 %v2784_v36, %v2784_v36  ;;  %v765_v38 = vpop.f32.mrf.mxu3  ;;  %v2837_v20 = vld [vmem:[%s3109_s5] ss:$0 sm:$0xff]  ;;  %s2002_s5 = smov 64  }
 0x1d9   :  { %v2809_v54 = vadd.f32 %v765_v38, %v2748_v53 }
 0x1da   :  { %v1038_v43 = vmax.f32 %v2787_v39, 0.0  ;;  %839 = vrot.lane.b32.xlu0 %v797_v37, %s2000_s3 }
 0x1db   :  { %v762_v49 = vpop.f32.mrf.mxu1  ;;  %831 = vrot.lane.b32.xlu2 %v793_v27, %s2000_s3  ;;  %v1042_v56 = vmax.f32 %v2809_v54, 0.0 }
 0x1dc   :  { %v2797_v51 = vadd.f32 %v762_v49, %v2743_v47  ;;  %1768 = vmatmul.msk.f32.gmra.mxu2 %vm1056_vm11, %v1038_v43 }
 0x1de   :  { %v1041_v11 = vmax.f32 %v2797_v51, 0.0 }
 0x1df   :  { %v1122_v28 = vpop.f32.mrf.mxu2 }
 0x1e0   :  { %1771 = vmatmul.msk.f32.vlgmr.msra.gmra.mxu3 %vm1056_vm11, %v1041_v11  ;;  %v1123_v13 = vadd.f32 %v2828_v33, %v1122_v28 }
 0x1e2   :  { %v1170_v48 = vmax.f32 %v1123_v13, 0.0 }
 0x1e3   :  { %837 = vrot.lane.b32.xlu2 %v796_v52, %s2000_s3 }
 0x1e4   :  { %1769 = vmatmul.msk.f32.gmra.mxu2 %vm1056_vm11, %v1039_v7  ;;  %v1190_v44 = vmul.f32 %v2837_v20, %v1170_v48 }
 0x1e6   :  { %v1207_v58 = vsel %vm1206_vm13, %v1190_v44, 0.0 }
 0x1e7   :  { %v1125_v10 = vpop.f32.mrf.mxu2 }
 0x1e8   :  { %1772 = vmatmul.msk.f32.gmra.mxu3 %vm1056_vm11, %v1042_v56  ;;  %v1126_v52 = vadd.f32 %v2828_v33, %v1125_v10 }
 0x1e9   :  { %v768_v60 = vpop.f32.mrf.mxu3 }
 0x1ea   :  { %v2820_v0 = vadd.f32 %v768_v60, %v2777_v15  ;;  %v1171_v4 = vmax.f32 %v1126_v52, 0.0 }
 0x1ec   :  { %1770 = vmatmul.msk.f32.gmra.mxu2 %vm1056_vm11, %v1040_v63  ;;  %v1043_v25 = vmax.f32 %v2820_v0, 0.0  ;;  %v1191_v10 = vmul.f32 %v2837_v20, %v1171_v4 }
 0x1f0   :  { %1773 = vmatmul.msk.f32.gmra.mxu3 %vm1056_vm11, %v1043_v25 }
 0x1fa   :  { %v1128_v5 = vpop.f32.mrf.mxu2 }
 0x1fb   :  { %v1129_v38 = vadd.f32 %v2828_v33, %v1128_v5  ;;  %v1210_v5 = vsel %vm1206_vm13, %v1191_v10, 0.0 }
 0x1fc   :  { %v844_v40 = vpop.permute.xlu2 %843 }
 0x1fd   :  { %v904_v21 = vsel %vm867_vm6, %v844_v40, 0.0  ;;  %v1172_v60 = vmax.f32 %v1129_v38, 0.0 }
 0x201   :  { %v842_v8 = vpop.permute.xlu1 %841 }
 0x202   :  { %v901_v2 = vsel %vm867_vm6, %v842_v8, 0.0  ;;  %v1131_v31 = vpop.f32.mrf.mxu2 }
 0x203   :  { %902 = vadd.xlane.f32.xlu1 %v901_v2  ;;  %v1132_v13 = vadd.f32 %v2828_v33, %v1131_v31 }
 0x204   :  { %869 = vadd.xlane.f32.xlu0 %v868_v61  ;;  %v826_v37 = vpop.permute.xlu2 %825  ;;  %v1192_v61 = vmul.f32 %v2837_v20, %v1172_v60 }
 0x205   :  { %v877_v27 = vsel %vm867_vm6, %v826_v37, 0.0 }
 0x206   :  { %v1213_v48 = vsel %vm1206_vm13, %v1192_v61, 0.0 }
 0x209   :  { %v824_v30 = vpop.permute.xlu1 %823 }
 0x20a   :  { %v874_v19 = vsel %vm867_vm6, %v824_v30, 0.0  ;;  %v1134_v43 = vpop.f32.mrf.mxu2 }
 0x20b   :  { %872 = vadd.xlane.f32.xlu1 %v871_v14  ;;  %v1173_v14 = vmax.f32 %v1132_v13, 0.0  ;;  %v1135_v30 = vadd.f32 %v2828_v33, %v1134_v43 }
 0x20c   :  { %905 = vadd.xlane.f32.xlu2 %v904_v21 }
 0x212   :  { %v1137_v7 = vpop.f32.mrf.mxu2 }
 0x213   :  { %1208 = vadd.xlane.f32.xlu1 %v1207_v58  ;;  %v1138_v44 = vadd.f32 %v2828_v33, %v1137_v7 }
 0x214   :  { %875 = vadd.xlane.f32.xlu2 %v874_v19  ;;  %v1193_v19 = vmul.f32 %v2837_v20, %v1173_v14 }
 0x215   :  { %v1175_v37 = vmax.f32 %v1138_v44, 0.0 }
 0x216   :  { %v1216_v38 = vsel %vm1206_vm13, %v1193_v19, 0.0 }
 0x217   :  { %v1195_v7 = vmul.f32 %v2837_v20, %v1175_v37 }
 0x21a   :  { %v1140_v57 = vpop.f32.mrf.mxu2 }
 0x21b   :  { %v1141_v43 = vadd.f32 %v2828_v33, %v1140_v57 }
 0x21c   :  { %878 = vadd.xlane.f32.xlu2 %v877_v27 }
 0x226   :  { %v846_v49 = vpop.permute.xlu0 %845 }
 0x227   :  { %v907_v11 = vsel %vm867_vm6, %v846_v49, 0.0  ;;  %v1174_v49 = vmax.f32 %v1135_v30, 0.0 }
 0x228   :  { %908 = vadd.xlane.f32.xlu0 %v907_v11  ;;  %v1143_v11 = vpop.f32.mrf.mxu2 }
 0x229   :  { %v1144_v61 = vadd.f32 %v2828_v33, %v1143_v11 }
 0x22b   :  { %v1177_v14 = vmax.f32 %v1144_v61, 0.0 }
 0x22d   :  { %v850_v56 = vpop.permute.xlu2 %849  ;;  %v1197_v30 = vmul.f32 %v2837_v20, %v1177_v14 }
 0x22e   :  { %v848_v63 = vpop.permute.xlu1 %847  ;;  %v828_v25 = vpop.permute.xlu0 %827  ;;  %v913_v28 = vsel %vm867_vm6, %v850_v56, 0.0  ;;  %v1194_v56 = vmul.f32 %v2837_v20, %v1174_v49 }
 0x22f   :  { %914 = vadd.xlane.f32.xlu2 %v913_v28  ;;  %v910_v8 = vsel %vm867_vm6, %v848_v63, 0.0  ;;  %v880_v2 = vsel %vm867_vm6, %v828_v25, 0.0  ;;  %v1222_v63 = vsel %vm1206_vm13, %v1195_v7, 0.0  ;;  %v1176_v25 = vmax.f32 %v1141_v43, 0.0 }
 0x230   :  { %911 = vadd.xlane.f32.xlu1 %v910_v8  ;;  %881 = vadd.xlane.f32.xlu0 %v880_v2  ;;  %v1219_v8 = vsel %vm1206_vm13, %v1194_v56, 0.0 }
 0x231   :  { %v1196_v10 = vmul.f32 %v2837_v20, %v1176_v25 }
 0x235   :  { %v832_v58 = vpop.permute.xlu2 %831 }
 0x236   :  { %v830_v40 = vpop.permute.xlu1 %829  ;;  %v834_v31 = vpop.permute.xlu0 %833  ;;  %v886_v27 = vsel %vm867_vm6, %v832_v58, 0.0 }
 0x237   :  { %1214 = vadd.xlane.f32.xlu2 %v1213_v48  ;;  %v883_v21 = vsel %vm867_vm6, %v830_v40, 0.0  ;;  %v889_v52 = vsel %vm867_vm6, %v834_v31, 0.0  ;;  %v1228_v31 = vsel %vm1206_vm13, %v1197_v30, 0.0 }
 0x238   :  { %884 = vadd.xlane.f32.xlu1 %v883_v21  ;;  %1211 = vadd.xlane.f32.xlu0 %v1210_v5  ;;  %v1225_v21 = vsel %vm1206_vm13, %v1196_v10, 0.0 }
 0x23d   :  { %v838_v13 = vpop.permute.xlu2 %837 }
 0x23e   :  { %v836_v60 = vpop.permute.xlu1 %835  ;;  %v895_v48 = vsel %vm867_vm6, %v838_v13, 0.0 }
 0x23f   :  { %887 = vadd.xlane.f32.xlu2 %v886_v27  ;;  %v892_v4 = vsel %vm867_vm6, %v836_v60, 0.0 }
 0x240   :  { %1217 = vadd.xlane.f32.xlu1 %v1216_v38  ;;  %890 = vadd.xlane.f32.xlu0 %v889_v52 }
 0x245   :  { %v1146_v28 = vpop.f32.mrf.mxu2 }
 0x246   :  { %v1147_v2 = vadd.f32 %v2828_v33, %v1146_v28 }
 0x247   :  { %1223 = vadd.xlane.f32.xlu2 %v1222_v63 }
 0x248   :  { %893 = vadd.xlane.f32.xlu1 %v892_v4  ;;  %1220 = vadd.xlane.f32.xlu0 %v1219_v8  ;;  %v1178_v40 = vmax.f32 %v1147_v2, 0.0 }
 0x24a   :  { %v1198_v44 = vmul.f32 %v2837_v20, %v1178_v40 }
 0x24c   :  { %v840_v57 = vpop.permute.xlu0 %839  ;;  %v1231_v58 = vsel %vm1206_vm13, %v1198_v44, 0.0 }
 0x24d   :  { %v898_v5 = vsel %vm867_vm6, %v840_v57, 0.0 }
 0x24f   :  { %896 = vadd.xlane.f32.xlu2 %v895_v48 }
 0x250   :  { %1226 = vadd.xlane.f32.xlu1 %v1225_v21  ;;  %899 = vadd.xlane.f32.xlu0 %v898_v5 }
 0x257   :  { %v1149_v19 = vpop.f32.mrf.mxu2  ;;  %1232 = vadd.xlane.f32.xlu2 %v1231_v58 }
 0x258   :  { %v1150_v37 = vadd.f32 %v2828_v33, %v1149_v19  ;;  %1229 = vadd.xlane.f32.xlu0 %v1228_v31 }
 0x25a   :  { %v1179_v27 = vmax.f32 %v1150_v37, 0.0 }
 0x25c   :  { %v1199_v49 = vmul.f32 %v2837_v20, %v1179_v27 }
 0x25e   :  { %v1234_v11 = vsel %vm1206_vm13, %v1199_v49, 0.0 }
 0x25f   :  { %v1152_v38 = vpop.f32.mrf.mxu2  ;;  %1235 = vadd.xlane.f32.xlu1 %v1234_v11 }
 0x260   :  { %v1153_v52 = vadd.f32 %v2828_v33, %v1152_v38 }
 0x262   :  { %v1180_v7 = vmax.f32 %v1153_v52, 0.0 }
 0x264   :  { %v1200_v43 = vmul.f32 %v2837_v20, %v1180_v7 }
 0x266   :  { %v1237_v56 = vsel %vm1206_vm13, %v1200_v43, 0.0 }
 0x267   :  { %v1155_v60 = vpop.f32.mrf.mxu2  ;;  %1238 = vadd.xlane.f32.xlu0 %v1237_v56 }
 0x268   :  { %v1156_v63 = vadd.f32 %v2828_v33, %v1155_v60 }
 0x26a   :  { %v1181_v25 = vmax.f32 %v1156_v63, 0.0 }
 0x26c   :  { %v1201_v28 = vmul.f32 %v2837_v20, %v1181_v25 }
 0x26e   :  { %v1240_v4 = vsel %vm1206_vm13, %v1201_v28, 0.0 }
 0x26f   :  { %v1158_v8 = vpop.f32.mrf.mxu2  ;;  %1241 = vadd.xlane.f32.xlu2 %v1240_v4 }
 0x270   :  { %v1159_v2 = vadd.f32 %v2828_v33, %v1158_v8 }
 0x272   :  { %v1182_v61 = vmax.f32 %v1159_v2, 0.0 }
 0x274   :  { %v1202_v13 = vmul.f32 %v2837_v20, %v1182_v61 }
 0x276   :  { %v1243_v10 = vsel %vm1206_vm13, %v1202_v13, 0.0  ;;  %v903_v14 = vpop.xlane.xlu1 %902 }
 0x277   :  { %1244 = vadd.xlane.f32.xlu1 %v1243_v10  ;;  %v870_v57 = vpop.xlane.xlu0 %869  ;;  %v927_v21 = vsub.f32 %v903_v14, %v2711_v24 }
 0x278   :  { %v916_v40 = vsub.f32 %v870_v57, %v2662_v17 }
 0x279   :  { %v943_v30 = vmul.f32 0.5, %v927_v21 }
 0x27a   :  { %v932_v48 = vmul.f32 0.5, %v916_v40 }
 0x27c   :  { %964 = vrot.lane.b32.xlu0 %v932_v48, %s2001_s4 }
 0x27e   :  { %v873_v19 = vpop.xlane.xlu1 %872 }
 0x27f   :  { %v906_v5 = vpop.xlane.xlu2 %905  ;;  %v917_v37 = vsub.f32 %v873_v19, %v2674_v16 }
 0x280   :  { %v928_v44 = vsub.f32 %v906_v5, %v2734_v62 }
 0x281   :  { %v933_v49 = vmul.f32 0.5, %v917_v37 }
 0x282   :  { %v944_v58 = vmul.f32 0.5, %v928_v44 }
 0x284   :  { %986 = vrot.lane.b32.xlu0 %v943_v30, %s2001_s4 }
 0x286   :  { %v2902_v38 = vpop.xlane.xlu1 %1208 }
 0x287   :  { %v876_v31 = vpop.xlane.xlu2 %875  ;;  %988 = vrot.lane.b32.xlu2 %v944_v58, %s2001_s4 }
 0x288   :  { %v918_v17 = vsub.f32 %v876_v31, %v2685_v50 }
 0x28a   :  { %v934_v27 = vmul.f32 0.5, %v918_v17  ;;  %v1161_v17 = vpop.f32.mrf.mxu3 }
 0x28f   :  { %v879_v11 = vpop.xlane.xlu2 %878  ;;  %968 = vrot.lane.b32.xlu2 %v934_v27, %s2001_s4 }
 0x290   :  { %v919_v24 = vsub.f32 %v879_v11, %v2692_v29  ;;  %966 = vrot.lane.b32.xlu1 %v933_v49, %s2001_s4  ;;  %v1162_v49 = vadd.f32 %v2828_v33, %v1161_v17 }
 0x292   :  { %v935_v62 = vmul.f32 0.5, %v919_v24  ;;  %v1164_v37 = vpop.f32.mrf.mxu3 }
 0x294   :  { %970 = vrot.lane.b32.xlu0 %v935_v62, %s2001_s4 }
 0x29a   :  { %v1167_v24 = vpop.f32.mrf.mxu3 }
 0x29b   :  { %v909_v52 = vpop.xlane.xlu0 %908 }
 0x29c   :  { %v929_v7 = vsub.f32 %v909_v52, %v2743_v47 }
 0x29e   :  { %v945_v50 = vmul.f32 0.5, %v929_v7  ;;  %v1168_v7 = vadd.f32 %v2828_v33, %v1167_v24 }
 0x2a0   :  { %990 = vrot.lane.b32.xlu1 %v945_v50, %s2001_s4 }
 0x2a2   :  { %v915_v16 = vpop.xlane.xlu2 %914 }
 0x2a3   :  { %v931_v43 = vsub.f32 %v915_v16, %v2777_v15  ;;  %v912_v56 = vpop.xlane.xlu1 %911  ;;  %v882_v60 = vpop.xlane.xlu0 %881 }
 0x2a4   :  { %v930_v29 = vsub.f32 %v912_v56, %v2748_v53  ;;  %v920_v63 = vsub.f32 %v882_v60, %v2699_v26  ;;  %v1185_v56 = vmax.f32 %v1168_v7, 0.0 }
 0x2a5   :  { %v947_v25 = vmul.f32 0.5, %v931_v43 }
 0x2a6   :  { %v946_v28 = vmul.f32 0.5, %v930_v29  ;;  %v936_v4 = vmul.f32 0.5, %v920_v63 }
 0x2a7   :  { %994 = vrot.lane.b32.xlu2 %v947_v25, %s2001_s4 }
 0x2a8   :  { %992 = vrot.lane.b32.xlu0 %v946_v28, %s2001_s4  ;;  %972 = vrot.lane.b32.xlu1 %v936_v4, %s2001_s4  ;;  %v1205_v4 = vmul.f32 %v2837_v20, %v1185_v56 }
 0x2aa   :  { %v2912_v47 = vpop.xlane.xlu2 %1214 }
 0x2ab   :  { %v885_v8 = vpop.xlane.xlu1 %884  ;;  %v2914_v2 = vpop.xlane.xlu0 %1211 }
 0x2ac   :  { %v921_v15 = vsub.f32 %v885_v8, %v2706_v46 }
 0x2ae   :  { %v937_v61 = vmul.f32 0.5, %v921_v15 }
 0x2b0   :  { %974 = vrot.lane.b32.xlu0 %v937_v61, %s2001_s4 }
 0x2b2   :  { %v888_v26 = vpop.xlane.xlu2 %887 }
 0x2b3   :  { %v922_v53 = vsub.f32 %v888_v26, %v2718_v6  ;;  %v2919_v13 = vpop.xlane.xlu1 %1217  ;;  %v891_v10 = vpop.xlane.xlu0 %890 }
 0x2b4   :  { %v923_v57 = vsub.f32 %v891_v10, %v2728_v9  ;;  %v1252_v10 = vsel %vm1206_vm13, %v1205_v4, 0.0 }
 0x2b5   :  { %v938_v40 = vmul.f32 0.5, %v922_v53 }
 0x2b6   :  { %v939_v48 = vmul.f32 0.5, %v923_v57 }
 0x2b7   :  { %976 = vrot.lane.b32.xlu2 %v938_v40, %s2001_s4 }
 0x2b8   :  { %978 = vrot.lane.b32.xlu1 %v939_v48, %s2001_s4 }
 0x2ba   :  { %v2924_v14 = vpop.xlane.xlu2 %1223 }
 0x2bb   :  { %v894_v46 = vpop.xlane.xlu1 %893  ;;  %v2926_v21 = vpop.xlane.xlu0 %1220 }
 0x2bc   :  { %v924_v5 = vsub.f32 %v894_v46, %v2756_v59 }
 0x2be   :  { %v940_v44 = vmul.f32 0.5, %v924_v5 }
 0x2c0   :  { %980 = vrot.lane.b32.xlu0 %v940_v44, %s2001_s4 }
 0x2c2   :  { %v897_v6 = vpop.xlane.xlu2 %896 }
 0x2c3   :  { %v925_v30 = vsub.f32 %v897_v6, %v2772_v23  ;;  %v900_v9 = vpop.xlane.xlu0 %899  ;;  %v2936_v59 = vpop.xlane.xlu1 %1226  ;;  %v1183_v23 = vmax.f32 %v1162_v49, 0.0 }
 0x2c4   :  { %v926_v58 = vsub.f32 %v900_v9, %v2784_v36  ;;  %v1165_v36 = vadd.f32 %v2828_v33, %v1164_v37 }
 0x2c5   :  { %v941_v19 = vmul.f32 0.5, %v925_v30  ;;  %v1203_v50 = vmul.f32 %v2837_v20, %v1183_v23 }
 0x2c6   :  { %v942_v31 = vmul.f32 0.5, %v926_v58  ;;  %v1184_v43 = vmax.f32 %v1165_v36, 0.0 }
 0x2c7   :  { %982 = vrot.lane.b32.xlu2 %v941_v19, %s2001_s4  ;;  %v1246_v60 = vsel %vm1206_vm13, %v1203_v50, 0.0 }
 0x2c8   :  { %984 = vrot.lane.b32.xlu1 %v942_v31, %s2001_s4  ;;  %v1204_v63 = vmul.f32 %v2837_v20, %v1184_v43 }
 0x2ca   :  { %v2934_v27 = vpop.xlane.xlu2 %1232  ;;  %v1249_v26 = vsel %vm1206_vm13, %v1204_v63, 0.0 }
 0x2cb   :  { %v2939_v11 = vpop.xlane.xlu0 %1229 }
 0x2d2   :  { %v2942_v52 = vpop.xlane.xlu1 %1235 }
 0x2da   :  { %v2946_v16 = vpop.xlane.xlu0 %1238 }
 0x2e2   :  { %v1242_v62 = vpop.xlane.xlu2 %1241 }
 0x2ea   :  { %v989_v29 = vpop.permute.xlu2 %988  ;;  %1247 = vadd.xlane.f32.xlu0 %v1246_v60  ;;  %v1245_v28 = vpop.xlane.xlu1 %1244 }
 0x2eb   :  { %v1024_v25 = vadd.f32 %v989_v29, %v2814_v22 }
 0x2ed   :  { %v1267_v8 = vadd.f32 %v1245_v28, %v1024_v25 }
 0x2ee   :  { %v965_v15 = vpop.permute.xlu0 %964 }
 0x2ef   :  { %v1786_v33 = vmul.f32 -1.442695, %v1267_v8  ;;  %v1012_v61 = vadd.f32 %v965_v15, %v2665_v41 }
 0x2f0   :  { %1250 = vadd.xlane.f32.xlu2 %v1249_v26 }
 0x2f1   :  { %1930 = vpow2.f32 %v1786_v33  ;;  %v1255_v53 = vadd.f32 %v2902_v38, %v1012_v61 }
 0x2f2   :  { %v969_v57 = vpop.permute.xlu2 %968  ;;  %1253 = vadd.xlane.f32.xlu1 %v1252_v10 }
 0x2f3   :  { %v1774_v40 = vmul.f32 -1.442695, %v1255_v53  ;;  %v1014_v22 = vadd.f32 %v969_v57, %v2688_v35 }
 0x2f5   :  { %1932 = vpow2.f32 %v1774_v40  ;;  %v1257_v20 = vadd.f32 %v2912_v47, %v1014_v22 }
 0x2f6   :  { %v987_v48 = vpop.permute.xlu0 %986 }
 0x2f7   :  { %v1931_v46 = vpop.eup %1930  ;;  %v1776_v5 = vmul.f32 -1.442695, %v1257_v20  ;;  %v1023_v41 = vadd.f32 %v987_v48, %v2801_v1 }
 0x2f8   :  { %v1331_v44 = vadd.f32 1.0, %v1931_v46 }
 0x2f9   :  { %1934 = vpow2.f32 %v1776_v5  ;;  %v1266_v6 = vadd.f32 %v1242_v62, %v1023_v41 }
 0x2fa   :  { %1936 = vrcp.f32 %v1331_v44  ;;  %v1524_v17 = vand.u32 2147483647, %v1331_v44  ;;  %v1526_v62 = vand.u32 2147483648, %v1331_v44  ;;  %vm1520_vm14 = vweird.f32 %v1331_v44 }
 0x2fb   :  { %v1933_v38 = vpop.eup %1932  ;;  %v1785_v30 = vmul.f32 -1.442695, %v1266_v6 }
 0x2fc   :  { %v1319_v9 = vadd.f32 1.0, %v1933_v38  ;;  %vm2967_vm15 = vcmp.eq.f32.partialorder %v1524_v17, 8.507059e+37  ;;  %v1527_v28 = vor.u32 1.1754944e-38, %v1526_v62 }
 0x2fd   :  { %1938 = vpow2.f32 %v1785_v30 }
 0x2fe   :  { %1940 = vrcp.f32 %v1319_v9  ;;  %v1346_v4 = vand.u32 2147483648, %v1319_v9  ;;  %vm1340_vm2 = vweird.f32 %v1319_v9 }
 0x2ff   :  { %v1935_v58 = vpop.eup %1934 }
 0x300   :  { %v1937_v19 = vpop.eup %1936  ;;  %v2959_v35 = vadd.f32 1.0, %v1935_v58  ;;  %v1347_v40 = vor.u32 1.1754944e-38, %v1346_v4 }
 0x301   :  { %v1516_v31 = vmul.f32 %v1937_v19, %v1331_v44  ;;  %vm1521_vm12 = vweird.f32 %v1937_v19  ;;  %v2972_v8 = vpop.permute.xlu2 %994 }
 0x302   :  { %1942 = vrcp.f32 %v2959_v35  ;;  %v967_v47 = vpop.permute.xlu1 %966  ;;  %vm1522_vm0 = vmor %vm1520_vm14, %vm1521_vm12  ;;  %v1376_v20 = vand.u32 2147483648, %v2959_v35  ;;  %v1374_v41 = vand.u32 2147483647, %v2959_v35  ;;  %vm1370_vm7 = vweird.f32 %v2959_v35 }
 0x303   :  { %v1939_v37 = vpop.eup %1938  ;;  %v1013_v1 = vadd.f32 %v967_v47, %v2677_v45  ;;  %v1517_v49 = vsub.f32 1.0, %v1516_v31 }
 0x304   :  { %v1941_v23 = vpop.eup %1940  ;;  %v2963_v24 = vadd.f32 1.0, %v1939_v37  ;;  %vm1375_vm10 = vcmp.eq.f32.partialorder %v1374_v41, 8.507059e+37 }
 0x305   :  { %v1256_v36 = vadd.f32 %v2914_v2, %v1013_v1  ;;  %v1518_v7 = vmul.f32 %v1937_v19, %v1517_v49  ;;  %v1336_v50 = vmul.f32 %v1941_v23, %v1319_v9  ;;  %vm1341_vm1 = vweird.f32 %v1941_v23 }
 0x306   :  { %1944 = vrcp.f32 %v2963_v24  ;;  %v971_v43 = vpop.permute.xlu0 %970  ;;  %v1344_v2 = vand.u32 2147483647, %v1319_v9  ;;  %vm1342_vm3 = vmor %vm1340_vm2, %vm1341_vm1  ;;  %v1511_v9 = vand.u32 2147483648, %v2963_v24  ;;  %v1509_v47 = vand.u32 2147483647, %v2963_v24 }
 0x307   :  { %v1775_v60 = vmul.f32 -1.442695, %v1256_v36  ;;  %v1015_v45 = vadd.f32 %v971_v43, %v2695_v12  ;;  %v1519_v29 = vadd.f32 %v1937_v19, %v1518_v7  ;;  %v1337_v63 = vsub.f32 1.0, %v1336_v50 }
 0x308   :  { %v1943_v25 = vpop.eup %1942  ;;  %vm1345_vm4 = vcmp.eq.f32.partialorder %v1344_v2, 8.507059e+37  ;;  %vm1505_vm11 = vweird.f32 %v2963_v24  ;;  %v1512_v7 = vor.u32 1.1754944e-38, %v1511_v9  ;;  %vm1510_vm13 = vcmp.eq.f32.partialorder %v1509_v47, 8.507059e+37 }
 0x309   :  { %1946 = vpow2.f32 %v1775_v60  ;;  %v1258_v15 = vadd.f32 %v2919_v13, %v1015_v45  ;;  %v1523_v33 = vsel %vm1522_vm0, %v1937_v19, %v1519_v29  ;;  %v1338_v61 = vmul.f32 %v1941_v23, %v1337_v63 }
 0x30a   :  { %v1528_v26 = vsel %vm2967_vm15, %v1527_v28, %v1523_v33  ;;  %v1366_v12 = vmul.f32 %v1943_v25, %v2959_v35  ;;  %vm1371_vm5 = vweird.f32 %v1943_v25  ;;  %v1377_v19 = vor.u32 1.1754944e-38, %v1376_v20 }
 0x30b   :  { %v1777_v53 = vmul.f32 -1.442695, %v1258_v15  ;;  %1615 = vrot.lane.b32.xlu1 %v1528_v26, %s2002_s5  ;;  %v1339_v10 = vadd.f32 %v1941_v23, %v1338_v61  ;;  %vm1372_vm8 = vmor %vm1370_vm7, %vm1371_vm5 }
 0x30c   :  { %v1945_v57 = vpop.eup %1944  ;;  %v1367_v22 = vsub.f32 1.0, %v1366_v12 }
 0x30d   :  { %1948 = vpow2.f32 %v1777_v53  ;;  %v1343_v13 = vsel %vm1342_vm3, %v1941_v23, %v1339_v10  ;;  %v1501_v48 = vmul.f32 %v1945_v57, %v2963_v24  ;;  %vm1506_vm9 = vweird.f32 %v1945_v57 }
 0x30e   :  { %v1348_v46 = vsel %vm1345_vm4, %v1347_v40, %v1343_v13  ;;  %v1368_v5 = vmul.f32 %v1943_v25, %v1367_v22  ;;  %vm1507_vm6 = vmor %vm1505_vm11, %vm1506_vm9 }
 0x30f   :  { %v1947_v44 = vpop.eup %1946  ;;  %1591 = vrot.lane.b32.xlu0 %v1348_v46, %s2002_s5  ;;  %v1502_v6 = vsub.f32 1.0, %v1501_v48 }
 0x310   :  { %v1320_v38 = vadd.f32 1.0, %v1947_v44  ;;  %v1369_v30 = vadd.f32 %v1943_v25, %v1368_v5 }
 0x311   :  { %v977_v58 = vpop.permute.xlu2 %976  ;;  %v1503_v31 = vmul.f32 %v1945_v57, %v1502_v6 }
 0x312   :  { %1950 = vrcp.f32 %v1320_v38  ;;  %v1018_v17 = vadd.f32 %v977_v58, %v2721_v32  ;;  %v2988_v37 = vpop.permute.xlu1 %990  ;;  %v1373_v1 = vsel %vm1372_vm8, %v1943_v25, %v1369_v30  ;;  %v1359_v25 = vand.u32 2147483647, %v1320_v38 }
 0x313   :  { %v1949_v49 = vpop.eup %1948  ;;  %v1378_v23 = vsel %vm1375_vm10, %v1377_v19, %v1373_v1  ;;  %v1504_v62 = vadd.f32 %v1945_v57, %v1503_v31  ;;  %v1361_v28 = vand.u32 2147483648, %v1320_v38  ;;  %vm1355_vm14 = vweird.f32 %v1320_v38 }
 0x314   :  { %v1322_v35 = vadd.f32 1.0, %v1949_v49  ;;  %v1261_v36 = vadd.f32 %v2936_v59, %v1018_v17  ;;  %1595 = vrot.lane.b32.xlu1 %v1378_v23, %s2002_s5  ;;  %vm1360_vm0 = vcmp.eq.f32.partialorder %v1359_v25, 8.507059e+37 }
 0x315   :  { %v1508_v50 = vsel %vm1507_vm6, %v1945_v57, %v1504_v62  ;;  %v1362_v10 = vor.u32 1.1754944e-38, %v1361_v28 }
 0x316   :  { %1952 = vrcp.f32 %v1322_v35  ;;  %v1780_v32 = vmul.f32 -1.442695, %v1261_v36  ;;  %v1513_v43 = vsel %vm1510_vm13, %v1512_v7, %v1508_v50  ;;  %v1389_v57 = vand.u32 2147483647, %v1322_v35 }
 0x317   :  { %1613 = vrot.lane.b32.xlu0 %v1513_v43, %s2002_s5  ;;  %vm1385_vm2 = vweird.f32 %v1322_v35 }
 0x318   :  { %v1951_v56 = vpop.eup %1950  ;;  %1954 = vpow2.f32 %v1780_v32  ;;  %vm1390_vm4 = vcmp.eq.f32.partialorder %v1389_v57, 8.507059e+37 }
 0x319   :  { %v1351_v60 = vmul.f32 %v1951_v56, %v1320_v38  ;;  %vm1356_vm12 = vweird.f32 %v1951_v56 }
 0x31a   :  { %v973_v45 = vpop.permute.xlu1 %972  ;;  %v2994_v29 = vpop.permute.xlu0 %992  ;;  %vm1357_vm15 = vmor %vm1355_vm14, %vm1356_vm12 }
 0x31b   :  { %v1016_v24 = vadd.f32 %v973_v45, %v2702_v55  ;;  %v1352_v59 = vsub.f32 1.0, %v1351_v60  ;;  %v1391_v55 = vand.u32 2147483648, %v1322_v35 }
 0x31c   :  { %v1953_v63 = vpop.eup %1952 }
 0x31d   :  { %v1259_v2 = vadd.f32 %v2926_v21, %v1016_v24  ;;  %v1353_v4 = vmul.f32 %v1951_v56, %v1352_v59  ;;  %v1381_v15 = vmul.f32 %v1953_v63, %v1322_v35  ;;  %vm1386_vm1 = vweird.f32 %v1953_v63 }
 0x31e   :  { %v1955_v33 = vpop.eup %1954  ;;  %vm1387_vm3 = vmor %vm1385_vm2, %vm1386_vm1  ;;  %v1392_v44 = vor.u32 1.1754944e-38, %v1391_v55 }
 0x31f   :  { %v1325_v61 = vadd.f32 1.0, %v1955_v33  ;;  %v1778_v26 = vmul.f32 -1.442695, %v1259_v2  ;;  %v1354_v12 = vadd.f32 %v1951_v56, %v1353_v4  ;;  %v1382_v53 = vsub.f32 1.0, %v1381_v15 }
 0x321   :  { %1956 = vrcp.f32 %v1325_v61  ;;  %v983_v40 = vpop.permute.xlu2 %982  ;;  %v1358_v22 = vsel %vm1357_vm15, %v1951_v56, %v1354_v12  ;;  %v1383_v13 = vmul.f32 %v1953_v63, %v1382_v53  ;;  %v1436_v1 = vand.u32 2147483648, %v1325_v61 }
 0x322   :  { %1958 = vpow2.f32 %v1778_v26  ;;  %v1021_v21 = vadd.f32 %v983_v40, %v2775_v34  ;;  %v975_v20 = vpop.permute.xlu0 %974  ;;  %v1363_v48 = vsel %vm1360_vm0, %v1362_v10, %v1358_v22  ;;  %v1434_v49 = vand.u32 2147483647, %v1325_v61 }
 0x323   :  { %v1017_v46 = vadd.f32 %v975_v20, %v2709_v3  ;;  %1593 = vrot.lane.b32.xlu2 %v1363_v48, %s2002_s5  ;;  %v1384_v5 = vadd.f32 %v1953_v63, %v1383_v13  ;;  %vm1430_vm7 = vweird.f32 %v1325_v61  ;;  %v1437_v32 = vor.u32 1.1754944e-38, %v1436_v1 }
 0x324   :  { %v1264_v41 = vadd.f32 %v2942_v52, %v1021_v21  ;;  %vm1435_vm9 = vcmp.eq.f32.partialorder %v1434_v49, 8.507059e+37 }
 0x325   :  { %v1260_v6 = vadd.f32 %v2924_v14, %v1017_v46  ;;  %v1388_v38 = vsel %vm1387_vm3, %v1953_v63, %v1384_v5 }
 0x326   :  { %v1783_v30 = vmul.f32 -1.442695, %v1264_v41  ;;  %v1393_v9 = vsel %vm1390_vm4, %v1392_v44, %v1388_v38 }
 0x327   :  { %v1957_v58 = vpop.eup %1956  ;;  %v1779_v34 = vmul.f32 -1.442695, %v1260_v6  ;;  %1597 = vrot.lane.b32.xlu0 %v1393_v9, %s2002_s5 }
 0x328   :  { %v1959_v19 = vpop.eup %1958  ;;  %1960 = vpow2.f32 %v1783_v30  ;;  %v1426_v3 = vmul.f32 %v1957_v58, %v1325_v61  ;;  %vm1431_vm5 = vweird.f32 %v1957_v58 }
 0x329   :  { %v1323_v31 = vadd.f32 1.0, %v1959_v19  ;;  %1962 = vpow2.f32 %v1779_v34  ;;  %vm1432_vm8 = vmor %vm1430_vm7, %vm1431_vm5 }
 0x32a   :  { %v979_v47 = vpop.permute.xlu1 %978  ;;  %v1427_v17 = vsub.f32 1.0, %v1426_v3 }
 0x32b   :  { %1964 = vrcp.f32 %v1323_v31  ;;  %v1019_v52 = vadd.f32 %v979_v47, %v2731_v42  ;;  %v1404_v25 = vand.u32 2147483647, %v1323_v31  ;;  %v1406_v28 = vand.u32 2147483648, %v1323_v31 }
 0x32c   :  { %v1428_v14 = vmul.f32 %v1957_v58, %v1427_v17  ;;  %vm1400_vm11 = vweird.f32 %v1323_v31 }
 0x32d   :  { %v1262_v23 = vadd.f32 %v2939_v11, %v1019_v52  ;;  %vm1405_vm13 = vcmp.eq.f32.partialorder %v1404_v25, 8.507059e+37  ;;  %v1407_v53 = vor.u32 1.1754944e-38, %v1406_v28 }
 0x32e   :  { %v1961_v62 = vpop.eup %1960  ;;  %v1429_v35 = vadd.f32 %v1957_v58, %v1428_v14 }
 0x32f   :  { %v1963_v36 = vpop.eup %1962  ;;  %v3006_v7 = vadd.f32 1.0, %v1961_v62  ;;  %v1781_v50 = vmul.f32 -1.442695, %v1262_v23 }
 0x330   :  { %v3008_v43 = vadd.f32 1.0, %v1963_v36  ;;  %v1433_v56 = vsel %vm1432_vm8, %v1957_v58, %v1429_v35 }
 0x331   :  { %v1965_v42 = vpop.eup %1964  ;;  %1966 = vrcp.f32 %v3006_v7  ;;  %v1438_v60 = vsel %vm1435_vm9, %v1437_v32, %v1433_v56  ;;  %v1479_v40 = vand.u32 2147483647, %v3006_v7  ;;  %v1481_v21 = vand.u32 2147483648, %v3006_v7 }
 0x332   :  { %1968 = vrcp.f32 %v3008_v43  ;;  %1603 = vrot.lane.b32.xlu1 %v1438_v60, %s2002_s5  ;;  %v981_v11 = vpop.permute.xlu0 %980  ;;  %v1396_v45 = vmul.f32 %v1965_v42, %v1323_v31  ;;  %vm1401_vm10 = vweird.f32 %v1965_v42  ;;  %v1421_v46 = vand.u32 2147483648, %v3008_v43 }
 0x333   :  { %1970 = vpow2.f32 %v1781_v50  ;;  %v1020_v24 = vadd.f32 %v981_v11, %v2759_v18  ;;  %vm1402_vm6 = vmor %vm1400_vm11, %vm1401_vm10  ;;  %v1419_v44 = vand.u32 2147483647, %v3008_v43  ;;  %vm1475_vm15 = vweird.f32 %v3006_v7 }
 0x334   :  { %v1397_v59 = vsub.f32 1.0, %v1396_v45  ;;  %v1482_v30 = vor.u32 1.1754944e-38, %v1481_v21  ;;  %vm1415_vm1 = vweird.f32 %v3008_v43  ;;  %vm1480_vm2 = vcmp.eq.f32.partialorder %v1479_v40, 8.507059e+37 }
 0x335   :  { %v1263_v63 = vadd.f32 %v2934_v27, %v1020_v24  ;;  %v1422_v19 = vor.u32 1.1754944e-38, %v1421_v46  ;;  %vm1420_vm4 = vcmp.eq.f32.partialorder %v1419_v44, 8.507059e+37 }
 0x336   :  { %v1398_v2 = vmul.f32 %v1965_v42, %v1397_v59 }
 0x337   :  { %v1967_v4 = vpop.eup %1966  ;;  %v1782_v15 = vmul.f32 -1.442695, %v1263_v63 }
 0x338   :  { %v1969_v33 = vpop.eup %1968  ;;  %v1399_v61 = vadd.f32 %v1965_v42, %v1398_v2  ;;  %v1471_v26 = vmul.f32 %v1967_v4, %v3006_v7  ;;  %vm1476_vm12 = vweird.f32 %v1967_v4 }
 0x339   :  { %v1971_v12 = vpop.eup %1970  ;;  %1972 = vpow2.f32 %v1782_v15  ;;  %v1411_v18 = vmul.f32 %v1969_v33, %v3008_v43  ;;  %vm1416_vm14 = vweird.f32 %v1969_v33  ;;  %vm1477_vm0 = vmor %vm1475_vm15, %vm1476_vm12 }
 0x33a   :  { %v1326_v10 = vadd.f32 1.0, %v1971_v12  ;;  %v985_v27 = vpop.permute.xlu1 %984  ;;  %v1403_v57 = vsel %vm1402_vm6, %v1965_v42, %v1399_v61  ;;  %v1472_v55 = vsub.f32 1.0, %v1471_v26  ;;  %vm1417_vm3 = vmor %vm1415_vm1, %vm1416_vm14 }
 0x33b   :  { %v1022_v22 = vadd.f32 %v985_v27, %v2787_v39  ;;  %v1408_v13 = vsel %vm1405_vm13, %v1407_v53, %v1403_v57  ;;  %v1412_v20 = vsub.f32 1.0, %v1411_v18  ;;  %v1025_v18 = vadd.f32 %v2988_v37, %v2797_v51 }
 0x33c   :  { %1974 = vrcp.f32 %v1326_v10  ;;  %1599 = vrot.lane.b32.xlu2 %v1408_v13, %s2002_s5  ;;  %v1473_v48 = vmul.f32 %v1967_v4, %v1472_v55  ;;  %v1451_v1 = vand.u32 2147483648, %v1326_v10  ;;  %v1449_v23 = vand.u32 2147483647, %v1326_v10 }
 0x33d   :  { %v1265_v5 = vadd.f32 %v2946_v16, %v1022_v22  ;;  %v1413_v41 = vmul.f32 %v1969_v33, %v1412_v20  ;;  %vm1445_vm7 = vweird.f32 %v1326_v10  ;;  %v1026_v55 = vadd.f32 %v2994_v29, %v2809_v54 }
 0x33e   :  { %v1474_v6 = vadd.f32 %v1967_v4, %v1473_v48  ;;  %v1452_v50 = vor.u32 1.1754944e-38, %v1451_v1  ;;  %vm1450_vm9 = vcmp.eq.f32.partialorder %v1449_v23, 8.507059e+37  ;;  %v1027_v22 = vadd.f32 %v2972_v8, %v2820_v0 }
 0x33f   :  { %v1973_v39 = vpop.eup %1972  ;;  %v1784_v38 = vmul.f32 -1.442695, %v1265_v5  ;;  %v1414_v9 = vadd.f32 %v1969_v33, %v1413_v41 }
 0x340   :  { %v1327_v58 = vadd.f32 1.0, %v1973_v39  ;;  %v1478_v34 = vsel %vm1477_vm0, %v1967_v4, %v1474_v6 }
 0x341   :  { %1976 = vpow2.f32 %v1784_v38  ;;  %v1483_v16 = vsel %vm1480_vm2, %v1482_v30, %v1478_v34  ;;  %v1418_v3 = vsel %vm1417_vm3, %v1969_v33, %v1414_v9 }
 0x342   :  { %v1975_v31 = vpop.eup %1974  ;;  %1978 = vrcp.f32 %v1327_v58  ;;  %1609 = vrot.lane.b32.xlu1 %v1483_v16, %s2002_s5  ;;  %v1423_v47 = vsel %vm1420_vm4, %v1422_v19, %v1418_v3  ;;  %v1466_v42 = vand.u32 2147483648, %v1327_v58  ;;  %v1464_v11 = vand.u32 2147483647, %v1327_v58 }
 0x343   :  { %1601 = vrot.lane.b32.xlu0 %v1423_v47, %s2002_s5  ;;  %v1441_v17 = vmul.f32 %v1975_v31, %v1326_v10  ;;  %vm1446_vm5 = vweird.f32 %v1975_v31  ;;  %vm1460_vm11 = vweird.f32 %v1327_v58 }
 0x344   :  { %vm1447_vm8 = vmor %vm1445_vm7, %vm1446_vm5  ;;  %v1467_v59 = vor.u32 1.1754944e-38, %v1466_v42  ;;  %vm1465_vm13 = vcmp.eq.f32.partialorder %v1464_v11, 8.507059e+37  ;;  %vm1639_vm5 = vcmask 7168  }
 0x345   :  { %v1442_v52 = vsub.f32 1.0, %v1441_v17 }
 0x347   :  { %v1977_v14 = vpop.eup %1976  ;;  %v1443_v49 = vmul.f32 %v1975_v31, %v1442_v52 }
 0x348   :  { %v1979_v62 = vpop.eup %1978  ;;  %v1329_v35 = vadd.f32 1.0, %v1977_v14 }
 0x349   :  { %v1444_v36 = vadd.f32 %v1975_v31, %v1443_v49  ;;  %v1456_v7 = vmul.f32 %v1979_v62, %v1327_v58  ;;  %vm1461_vm10 = vweird.f32 %v1979_v62 }
 0x34a   :  { %1980 = vrcp.f32 %v1329_v35  ;;  %vm1462_vm6 = vmor %vm1460_vm11, %vm1461_vm10  ;;  %v1496_v4 = vand.u32 2147483648, %v1329_v35  ;;  %v1494_v33 = vand.u32 2147483647, %v1329_v35  ;;  %vm1490_vm14 = vweird.f32 %v1329_v35 }
 0x34b   :  { %v1448_v32 = vsel %vm1447_vm8, %v1975_v31, %v1444_v36  ;;  %v1457_v43 = vsub.f32 1.0, %v1456_v7 }
 0x34c   :  { %v1453_v56 = vsel %vm1450_vm9, %v1452_v50, %v1448_v32  ;;  %v1497_v26 = vor.u32 1.1754944e-38, %v1496_v4  ;;  %vm1495_vm0 = vcmp.eq.f32.partialorder %v1494_v33, 8.507059e+37 }
 0x34d   :  { %1605 = vrot.lane.b32.xlu2 %v1453_v56, %s2002_s5  ;;  %v1458_v60 = vmul.f32 %v1979_v62, %v1457_v43 }
 0x34f   :  { %v1459_v45 = vadd.f32 %v1979_v62, %v1458_v60 }
 0x350   :  { %v1981_v24 = vpop.eup %1980 }
 0x351   :  { %v1463_v63 = vsel %vm1462_vm6, %v1979_v62, %v1459_v45  ;;  %v1486_v25 = vmul.f32 %v1981_v24, %v1329_v35  ;;  %vm1491_vm12 = vweird.f32 %v1981_v24 }
 0x352   :  { %v1468_v28 = vsel %vm1465_vm13, %v1467_v59, %v1463_v63  ;;  %vm1492_vm15 = vmor %vm1490_vm14, %vm1491_vm12 }
 0x353   :  { %1607 = vrot.lane.b32.xlu0 %v1468_v28, %s2002_s5  ;;  %v1487_v2 = vsub.f32 1.0, %v1486_v25 }
 0x355   :  { %v1488_v15 = vmul.f32 %v1981_v24, %v1487_v2 }
 0x357   :  { %v1489_v61 = vadd.f32 %v1981_v24, %v1488_v15 }
 0x359   :  { %v1493_v12 = vsel %vm1492_vm15, %v1981_v24, %v1489_v61 }
 0x35a   :  { %v1498_v53 = vsel %vm1495_vm0, %v1497_v26, %v1493_v12 }
 0x35b   :  { %1611 = vrot.lane.b32.xlu2 %v1498_v53, %s2002_s5 }
 0x35d   :  { %v1248_v10 = vpop.xlane.xlu0 %1247 }
 0x35e   :  { %v1268_v27 = vadd.f32 %v1248_v10, %v1025_v18 }
 0x360   :  { %v1787_v57 = vmul.f32 -1.442695, %v1268_v27 }
 0x362   :  { %1982 = vpow2.f32 %v1787_v57 }
 0x363   :  { %v1251_v40 = vpop.xlane.xlu2 %1250 }
 0x364   :  { %v1269_v13 = vadd.f32 %v1251_v40, %v1026_v55 }
 0x365   :  { %v1254_v21 = vpop.xlane.xlu1 %1253 }
 0x366   :  { %v1788_v20 = vmul.f32 -1.442695, %v1269_v13  ;;  %v1270_v48 = vadd.f32 %v1254_v21, %v1027_v22 }
 0x368   :  { %v1983_v46 = vpop.eup %1982  ;;  %1984 = vpow2.f32 %v1788_v20  ;;  %v1789_v5 = vmul.f32 -1.442695, %v1270_v48 }
 0x369   :  { %v1332_v41 = vadd.f32 1.0, %v1983_v46 }
 0x36a   :  { %1986 = vpow2.f32 %v1789_v5 }
 0x36b   :  { %1988 = vrcp.f32 %v1332_v41  ;;  %v1541_v0 = vand.u32 2147483648, %v1332_v41  ;;  %v1539_v38 = vand.u32 2147483647, %v1332_v41  ;;  %vm1535_vm2 = vweird.f32 %v1332_v41 }
 0x36d   :  { %v1542_v19 = vor.u32 1.1754944e-38, %v1541_v0  ;;  %vm1540_vm4 = vcmp.eq.f32.partialorder %v1539_v38, 8.507059e+37 }
 0x36e   :  { %v1985_v51 = vpop.eup %1984 }
 0x36f   :  { %v1333_v37 = vadd.f32 1.0, %v1985_v51 }
 0x370   :  { %v1987_v44 = vpop.eup %1986 }
 0x371   :  { %v1989_v6 = vpop.eup %1988  ;;  %1990 = vrcp.f32 %v1333_v37  ;;  %v1334_v54 = vadd.f32 1.0, %v1987_v44  ;;  %v1556_v17 = vand.u32 2147483648, %v1333_v37  ;;  %v1554_v1 = vand.u32 2147483647, %v1333_v37 }
 0x372   :  { %v1531_v29 = vmul.f32 %v1989_v6, %v1332_v41  ;;  %vm1536_vm1 = vweird.f32 %v1989_v6  ;;  %vm1550_vm8 = vweird.f32 %v1333_v37 }
 0x373   :  { %1992 = vrcp.f32 %v1334_v54  ;;  %vm1537_vm3 = vmor %vm1535_vm2, %vm1536_vm1  ;;  %v1571_v62 = vand.u32 2147483648, %v1334_v54  ;;  %v1569_v7 = vand.u32 2147483647, %v1334_v54  ;;  %v1557_v50 = vor.u32 1.1754944e-38, %v1556_v17 }
 0x374   :  { %v1532_v39 = vsub.f32 1.0, %v1531_v29  ;;  %vm1555_vm11 = vcmp.eq.f32.partialorder %v1554_v1, 8.507059e+37  ;;  %vm1565_vm6 = vweird.f32 %v1334_v54 }
 0x375   :  { %v1572_v60 = vor.u32 1.1754944e-38, %v1571_v62  ;;  %vm1570_vm12 = vcmp.eq.f32.partialorder %v1569_v7, 8.507059e+37 }
 0x376   :  { %v1533_v8 = vmul.f32 %v1989_v6, %v1532_v39 }
 0x377   :  { %v1991_v30 = vpop.eup %1990 }
 0x378   :  { %v1534_v9 = vadd.f32 %v1989_v6, %v1533_v8  ;;  %v1546_v58 = vmul.f32 %v1991_v30, %v1333_v37  ;;  %vm1551_vm7 = vweird.f32 %v1991_v30 }
 0x379   :  { %v1993_v34 = vpop.eup %1992  ;;  %vm1552_vm10 = vmor %vm1550_vm8, %vm1551_vm7 }
 0x37a   :  { %v1538_v16 = vsel %vm1537_vm3, %v1989_v6, %v1534_v9  ;;  %v1547_v3 = vsub.f32 1.0, %v1546_v58  ;;  %v1561_v31 = vmul.f32 %v1993_v34, %v1334_v54  ;;  %vm1566_vm9 = vweird.f32 %v1993_v34 }
 0x37b   :  { %v1543_v47 = vsel %vm1540_vm4, %v1542_v19, %v1538_v16  ;;  %vm1567_vm13 = vmor %vm1565_vm6, %vm1566_vm9 }
 0x37c   :  { %1617 = vrot.lane.b32.xlu2 %v1543_v47, %s2002_s5  ;;  %v1548_v52 = vmul.f32 %v1991_v30, %v1547_v3  ;;  %v1562_v14 = vsub.f32 1.0, %v1561_v31 }
 0x37d   :  { %v1594_v49 = vpop.permute.xlu2 %1593  ;;  %v1616_v23 = vpop.permute.xlu1 %1615 }
 0x37e   :  { %1641 = vst.msk [vmem:[%s3110_s6 + $0x8] sm:$0xff] %vm1639_vm5, %v1594_v49  ;;  %v1549_v35 = vadd.f32 %v1991_v30, %v1548_v52  ;;  %v1563_v36 = vmul.f32 %v1993_v34, %v1562_v14 }
 0x37f   :  { %1652 = vst.msk [vmem:[%s3110_s6 + $0x60] sm:$0xff] %vm1639_vm5, %v1616_v23 }
 0x380   :  { %v1553_v32 = vsel %vm1552_vm10, %v1991_v30, %v1549_v35  ;;  %v1564_v43 = vadd.f32 %v1993_v34, %v1563_v36 }
 0x381   :  { %v1592_v56 = vpop.permute.xlu0 %1591  ;;  %v1558_v42 = vsel %vm1555_vm11, %v1557_v50, %v1553_v32 }
 0x382   :  { %1640 = vst.msk [vmem:[%s3110_s6] sm:$0xff] %vm1639_vm5, %v1592_v56  ;;  %1619 = vrot.lane.b32.xlu0 %v1558_v42, %s2002_s5  ;;  %v1568_v11 = vsel %vm1567_vm13, %v1993_v34, %v1564_v43 }
 0x383   :  { %v1573_v45 = vsel %vm1570_vm12, %v1572_v60, %v1568_v11 }
 0x384   :  { %1621 = vrot.lane.b32.xlu1 %v1573_v45, %s2002_s5 }
 0x386   :  { %v1596_v24 = vpop.permute.xlu1 %1595 }
 0x387   :  { %1642 = vst.msk [vmem:[%s3110_s6 + $0x10] sm:$0xff] %vm1639_vm5, %v1596_v24 }
 0x389   :  { %v1614_v59 = vpop.permute.xlu0 %1613 }
 0x38a   :  { %1651 = vst.msk [vmem:[%s3110_s6 + $0x58] sm:$0xff] %vm1639_vm5, %v1614_v59 }
 0x396   :  { %v1600_v63 = vpop.permute.xlu2 %1599 }
 0x397   :  { %1644 = vst.msk [vmem:[%s3110_s6 + $0x20] sm:$0xff] %vm1639_vm5, %v1600_v63 }
 0x399   :  { %v1598_v25 = vpop.permute.xlu0 %1597 }
 0x39a   :  { %1643 = vst.msk [vmem:[%s3110_s6 + $0x18] sm:$0xff] %vm1639_vm5, %v1598_v25 }
 0x3a4   :  { %v1604_v28 = vpop.permute.xlu1 %1603 }
 0x3a5   :  { %1646 = vst.msk [vmem:[%s3110_s6 + $0x30] sm:$0xff] %vm1639_vm5, %v1604_v28 }
 0x3a7   :  { %v1606_v2 = vpop.permute.xlu2 %1605 }
 0x3a8   :  { %1647 = vst.msk [vmem:[%s3110_s6 + $0x38] sm:$0xff] %vm1639_vm5, %v1606_v2 }
 0x3b4   :  { %v1610_v4 = vpop.permute.xlu1 %1609 }
 0x3b5   :  { %1649 = vst.msk [vmem:[%s3110_s6 + $0x48] sm:$0xff] %vm1639_vm5, %v1610_v4  ;;  %v1612_v15 = vpop.permute.xlu2 %1611  ;;  %v1602_v33 = vpop.permute.xlu0 %1601 }
 0x3b6   :  { %1650 = vst.msk [vmem:[%s3110_s6 + $0x50] sm:$0xff] %vm1639_vm5, %v1612_v15 }
 0x3b7   :  { %1645 = vst.msk [vmem:[%s3110_s6 + $0x28] sm:$0xff] %vm1639_vm5, %v1602_v33 }
 0x3c5   :  { %v1608_v61 = vpop.permute.xlu0 %1607 }
 0x3c6   :  { %1648 = vst.msk [vmem:[%s3110_s6 + $0x40] sm:$0xff] %vm1639_vm5, %v1608_v61 }
 0x3d6   :  { %v1618_v26 = vpop.permute.xlu2 %1617 }
 0x3d7   :  { %1653 = vst.msk [vmem:[%s3110_s6 + $0x68] sm:$0xff] %vm1639_vm5, %v1618_v26 }
 0x3f4   :  { %v1620_v12 = vpop.permute.xlu0 %1619 }
 0x3f5   :  { %1654 = vst.msk [vmem:[%s3110_s6 + $0x70] sm:$0xff] %vm1639_vm5, %v1620_v12 }
 0x3f6   :  { %v1622_v53 = vpop.permute.xlu1 %1621 }
 0x3f7   :  { %1655 = vst.msk [vmem:[%s3110_s6 + $0x78] sm:$0xff] %vm1639_vm5, %v1622_v53 }

</bundles_post_ra>
